<compile_context>
chip_gen: v7x
topology: tpu7x:2x2x1
jax: 0.10.0
libtpu: 0.0.40
codegen_flags: <defaults>
</compile_context>

<pallas_src>
import functools

import jax
import jax.numpy as jnp
from jax.experimental import pallas as pl
from jax.experimental.pallas import tpu as pltpu


# ----------------------------- Pallas kernel -----------------------------

def _residual_block_kernel(x_ref, w1_ref, w2_ref, prm_ref, mask_ref,
                           sel_ref, selt_ref, out_ref, *,
                           height, width, n_samples, c_pad):
    """Whole (padded) batch in one invocation, lane axis = N*H*W.

    x_ref:    (Cp, L)          input features, L = N*H*W (sample-major)
    w1_ref:   (Cp, 9*Cp + 8)   packed conv1 weight; col t*Cp+ic = W1[oc,ic,kh,kw],
                               col 9*Cp = bias, last 7 cols zero (K multiple of 8)
    w2_ref:   (Cp, 9*Cp + 8)   packed conv2 weight (same layout)
    prm_ref:  (4, Cp, N)       [sigma1, mu1, sigma2, mu2] per (channel, sample)
    mask_ref: (9*Cp, L)        {0,1} per-tap zero-pad validity, pre-broadcast
    sel_ref:  (L, N)           segment selector (lane l belongs to sample l//HW)
    selt_ref: (N, L)           its transpose (per-sample lane broadcast)
    out_ref:  (Cp, L)
    """
    hw = height * width
    lanes = n_samples * hw
    eps = 1e-5

    feat_in = x_ref[...]                         # (Cp, L)
    sel = sel_ref[...]                           # (L, N)
    selt = selt_ref[...]                         # (N, L)

    # Constant block appended to the im2col patch: row 0 = ones (bias tap),
    # rows 1..7 = zeros (keeps the contraction dim a multiple of 8).
    rid = jax.lax.broadcasted_iota(jnp.int32, (8, lanes), 0)
    bias_blk = (rid == 0).astype(jnp.float32)

    def conv3x3(feat, w_ref):
        # Build the (9*Cp + 8, L) im2col patch in registers from lane
        # rotations (XLU) + precomputed boundary masks, then ONE MXU matmul.
        tiles = []
        for kh in range(3):
            for kw in range(3):
                t = kh * 3 + kw
                off = (kh - 1) * width + (kw - 1)     # flat spatial offset
                if off == 0:
                    tiles.append(feat)                # center tap, always valid
                else:
                    # shifted[l] = feat[(l + off) mod L]; OOB / cross-sample
                    # positions are zeroed by the tap mask.
                    sh = pltpu.roll(feat, shift=(-off) % lanes, axis=1)
                    tiles.append(sh * mask_ref[t * c_pad:(t + 1) * c_pad, :])
        tiles.append(bias_blk)
        patch = jnp.concatenate(tiles, axis=0)        # (9*Cp + 8, L)
        return jnp.dot(w_ref[...], patch,
                       preferred_element_type=jnp.float32)

    def adain(feat, sigma, mu):
        # Per-sample stats & broadcasts via segment-selector matmuls (MXU),
        # keeping the XLU free for the conv rolls.
        mean = jnp.dot(feat, sel,
                       preferred_element_type=jnp.float32) * (1.0 / hw)      # (Cp, N)
        cen = feat - jnp.dot(mean, selt, preferred_element_type=jnp.float32)  # (Cp, L)
        var = jnp.dot(cen * cen, sel,
                      preferred_element_type=jnp.float32) * (1.0 / (hw - 1))  # unbiased
        std = jnp.sqrt(var) + eps                     # torch: eps added to std
        inv = pl.reciprocal(std, approx=True)         # EUP slot
        inv = inv * (2.0 - std * inv)                 # 1 Newton step -> ~f32 exact
        scale = sigma * inv                           # (Cp, N)
        return (jnp.dot(scale, selt, preferred_element_type=jnp.float32) * cen
                + jnp.dot(mu, selt, preferred_element_type=jnp.float32))

    h = conv3x3(feat_in, w1_ref)                      # conv1 (+bias)
    h = adain(h, prm_ref[0], prm_ref[1])              # AdaIN 1
    h = jnp.maximum(h, 0.0)                           # ReLU
    h = conv3x3(h, w2_ref)                            # conv2 (+bias)
    h = adain(h, prm_ref[2], prm_ref[3])              # AdaIN 2
    out_ref[...] = h + feat_in                        # residual (OC == C)


# ------------------------------ JAX wrapper ------------------------------

def residual_block_adaptive(x, w1, b1, sigma1, mu1, w2, b2, sigma2, mu2):
    """x: (N, C, H, W) f32; w*: (OC, C, 3, 3) already spectral-normalized;
    b*: (OC,); sigma*/mu*: (N, OC)."""
    N, C, H, W = x.shape
    OC = w1.shape[0]
    assert OC == C, "residual add requires in_channel == out_channel"
    HW = H * W
    L = N * HW
    Cp = max(8, -(-C // 8) * 8)                       # channel pad to sublane mult

    def pack_weight(w, b):
        wp = jnp.zeros((Cp, Cp, 3, 3), jnp.float32).at[:C, :C].set(
            w.astype(jnp.float32))
        core = jnp.transpose(wp, (0, 2, 3, 1)).reshape(Cp, 9 * Cp)
        bp = jnp.zeros((Cp,), jnp.float32).at[:C].set(b.astype(jnp.float32))
        bias_cols = jnp.concatenate(
            [bp[:, None], jnp.zeros((Cp, 7), jnp.float32)], axis=1)
        return jnp.concatenate([core, bias_cols], axis=1)     # (Cp, 9*Cp + 8)

    w1p = pack_weight(w1, b1)
    w2p = pack_weight(w2, b2)

    # lane-dense, sample-major activations: (Cp, N*HW)
    x_flat = jnp.transpose(x, (1, 0, 2, 3)).reshape(C, L).astype(jnp.float32)
    x_p = jnp.zeros((Cp, L), jnp.float32).at[:C, :].set(x_flat)

    def pad_param(a):                                  # (N, C) -> (Cp, N)
        return jnp.zeros((Cp, N), jnp.float32).at[:C, :].set(
            a.T.astype(jnp.float32))
    prm = jnp.stack([pad_param(sigma1), pad_param(mu1),
                     pad_param(sigma2), pad_param(mu2)], axis=0)  # (4, Cp, N)

    # per-tap zero-pad validity masks, replicated across samples and channels
    p = jnp.arange(HW)
    hh, ww = p // W, p % W
    rows = []
    for kh in range(3):
        for kw in range(3):
            dh, dw = kh - 1, kw - 1
            valid = ((hh + dh >= 0) & (hh + dh < H) &
                     (ww + dw >= 0) & (ww + dw < W)).astype(jnp.float32)
            valid = jnp.tile(valid, (N,))                         # (L,)
            rows.append(jnp.broadcast_to(valid[None, :], (Cp, L)))
    tap_mask = jnp.concatenate(rows, axis=0)                      # (9*Cp, L)

    # segment selector: lane l belongs to sample l // HW
    sample_id = jnp.arange(L) // HW
    sel = (sample_id[:, None] == jnp.arange(N)[None, :]).astype(jnp.float32)
    selt = sel.T                                                  # (N, L)

    kernel = functools.partial(_residual_block_kernel,
                               height=H, width=W, n_samples=N, c_pad=Cp)
    out_flat = pl.pallas_call(
        kernel,
        out_shape=jax.ShapeDtypeStruct((Cp, L), jnp.float32),
    )(x_p, w1p, w2p, prm, tap_mask, sel, selt)

    out = out_flat[:C].reshape(C, N, H, W)
    return jnp.transpose(out, (1, 0, 2, 3))


# ------------------------- parameter setup (glue) -------------------------

def _spectral_normalize(w, key, n_iter=30):
    """Spectral normalization of a conv weight (OC, C, kh, kw), matching the
    W / sigma_max semantics of torch spectral_norm (power iteration done in
    glue since params here are synthetic and deterministic)."""
    oc = w.shape[0]
    wm = w.reshape(oc, -1)
    u = jax.random.normal(key, (oc,), dtype=jnp.float32)
    u = u / (jnp.linalg.norm(u) + 1e-12)
    v = None
    for _ in range(n_iter):
        v = wm.T @ u
        v = v / (jnp.linalg.norm(v) + 1e-12)
        u = wm @ v
        u = u / (jnp.linalg.norm(u) + 1e-12)
    sigma = u @ (wm @ v)
    return w / sigma


# --------------------------- pure-JAX reference ---------------------------

def _conv_ref(x, w, b):
    y = jax.lax.conv_general_dilated(
        x, w, (1, 1), 'SAME', dimension_numbers=('NCHW', 'OIHW', 'NCHW'))
    return y + b[None, :, None, None]


def _adain_ref(fm, sigma, mu, eps=1e-5):
    n, c, h, w = fm.shape
    f = fm.reshape(n, c, h * w)
    mean = jnp.mean(f, axis=-1, keepdims=True)
    std = jnp.sqrt(jnp.sum((f - mean) ** 2, axis=-1, keepdims=True)
                   / (h * w - 1)) + eps
    f = sigma[:, :, None] * ((f - mean) / std) + mu[:, :, None]
    return f.reshape(n, c, h, w)


def _forward_ref(x, w1, b1, s1, m1, w2, b2, s2, m2):
    left = _conv_ref(x, w1, b1)
    left = _adain_ref(left, s1, m1)
    left = jax.nn.relu(left)
    left = _conv_ref(left, w2, b2)
    left = _adain_ref(left, s2, m2)
    return left + x


# ----------------------------------- main -----------------------------------

if __name__ == "__main__":
    N, C, H, W = 2, 4, 16, 16      # in_channel == out_channel == 4
    K = 3

    key = jax.random.PRNGKey(0)
    keys = jax.random.split(key, 10)

    # Deterministic Conv2d-style init (uniform with bound 1/sqrt(fan_in)).
    fan_in = C * K * K
    bound = 1.0 / jnp.sqrt(fan_in)
    w1_raw = jax.random.uniform(keys[0], (C, C, K, K), jnp.float32, -bound, bound)
    b1 = jax.random.uniform(keys[1], (C,), jnp.float32, -bound, bound)
    w2_raw = jax.random.uniform(keys[2], (C, C, K, K), jnp.float32, -bound, bound)
    b2 = jax.random.uniform(keys[3], (C,), jnp.float32, -bound, bound)

    w1 = _spectral_normalize(w1_raw, keys[4])
    w2 = _spectral_normalize(w2_raw, keys[5])

    x = jax.random.normal(keys[6], (N, C, H, W), jnp.float32)
    sigma_1 = 0.5 + jax.random.uniform(keys[7], (N, C), jnp.float32)
    mu_1 = jax.random.normal(keys[8], (N, C), jnp.float32) * 0.5
    sigma_2 = 0.5 + jax.random.uniform(keys[9], (N, C), jnp.float32)
    mu_2 = jax.random.normal(keys[7], (N, C), jnp.float32) * 0.5

    out = residual_block_adaptive(x, w1, b1, sigma_1, mu_1,
                                  w2, b2, sigma_2, mu_2)
    out = jax.block_until_ready(out)

    ref = _forward_ref(x, w1, b1, sigma_1, mu_1, w2, b2, sigma_2, mu_2)
    ref = jax.block_until_ready(ref)

    assert out.shape == (N, C, H, W)
    assert jnp.allclose(out, ref, rtol=1e-3, atol=1e-3), (
        float(jnp.max(jnp.abs(out - ref))))

    print("KERNEL_OK")
</pallas_src>

<mosaic_0001>
module attributes {stable_mosaic.version = 11 : i64} {
  func.func @_residual_block_kernel(%arg0: memref<8x512xf32, #tpu.memory_space<vmem>>, %arg1: memref<8x80xf32, #tpu.memory_space<vmem>>, %arg2: memref<8x80xf32, #tpu.memory_space<vmem>>, %arg3: memref<4x8x2xf32, #tpu.memory_space<vmem>>, %arg4: memref<72x512xf32, #tpu.memory_space<vmem>>, %arg5: memref<512x2xf32, #tpu.memory_space<vmem>>, %arg6: memref<2x512xf32, #tpu.memory_space<vmem>>, %arg7: memref<8x512xf32, #tpu.memory_space<vmem>>) attributes {dimension_semantics = [], scalar_prefetch = 0 : i64, scratch_operands = 0 : i64, tpu.core_type = #tpu.core_type<tc>} {
    %c0 = arith.constant 0 : index
    %c0_0 = arith.constant 0 : index
    %0 = vector.load %arg0[%c0, %c0_0] : memref<8x512xf32, #tpu.memory_space<vmem>>, vector<8x512xf32>
    %c0_1 = arith.constant 0 : index
    %c0_2 = arith.constant 0 : index
    %1 = vector.load %arg5[%c0_1, %c0_2] : memref<512x2xf32, #tpu.memory_space<vmem>>, vector<512x2xf32>
    %c0_3 = arith.constant 0 : index
    %c0_4 = arith.constant 0 : index
    %2 = vector.load %arg6[%c0_3, %c0_4] : memref<2x512xf32, #tpu.memory_space<vmem>>, vector<2x512xf32>
    %3 = tpu.iota {dimensions = array<i32: 0>} : vector<8x512xi32>
    %c0_i32 = arith.constant 0 : i32
    %4 = vector.broadcast %c0_i32 : i32 to vector<8x512xi32>
    %5 = arith.cmpi eq, %3, %4 : vector<8x512xi32>
    %6 = arith.extui %5 : vector<8x512xi1> to vector<8x512xi32>
    %7 = arith.sitofp %6 : vector<8x512xi32> to vector<8x512xf32>
    %c17_i32 = arith.constant 17 : i32
    %8 = tpu.dynamic_rotate %0 by %c17_i32 dim 1 : vector<8x512xf32>, i32 -> vector<8x512xf32>
    %c0_5 = arith.constant 0 : index
    %c0_6 = arith.constant 0 : index
    %9 = vector.load %arg4[%c0_5, %c0_6] : memref<72x512xf32, #tpu.memory_space<vmem>>, vector<8x512xf32>
    %10 = arith.mulf %8, %9 : vector<8x512xf32>
    %c16_i32 = arith.constant 16 : i32
    %11 = tpu.dynamic_rotate %0 by %c16_i32 dim 1 : vector<8x512xf32>, i32 -> vector<8x512xf32>
    %c8 = arith.constant 8 : index
    %c0_7 = arith.constant 0 : index
    %12 = vector.load %arg4[%c8, %c0_7] : memref<72x512xf32, #tpu.memory_space<vmem>>, vector<8x512xf32>
    %13 = arith.mulf %11, %12 : vector<8x512xf32>
    %c15_i32 = arith.constant 15 : i32
    %14 = tpu.dynamic_rotate %0 by %c15_i32 dim 1 : vector<8x512xf32>, i32 -> vector<8x512xf32>
    %c16 = arith.constant 16 : index
    %c0_8 = arith.constant 0 : index
    %15 = vector.load %arg4[%c16, %c0_8] : memref<72x512xf32, #tpu.memory_space<vmem>>, vector<8x512xf32>
    %16 = arith.mulf %14, %15 : vector<8x512xf32>
    %c1_i32 = arith.constant 1 : i32
    %17 = tpu.dynamic_rotate %0 by %c1_i32 dim 1 : vector<8x512xf32>, i32 -> vector<8x512xf32>
    %c24 = arith.constant 24 : index
    %c0_9 = arith.constant 0 : index
    %18 = vector.load %arg4[%c24, %c0_9] : memref<72x512xf32, #tpu.memory_space<vmem>>, vector<8x512xf32>
    %19 = arith.mulf %17, %18 : vector<8x512xf32>
    %c511_i32 = arith.constant 511 : i32
    %20 = tpu.dynamic_rotate %0 by %c511_i32 dim 1 : vector<8x512xf32>, i32 -> vector<8x512xf32>
    %c40 = arith.constant 40 : index
    %c0_10 = arith.constant 0 : index
    %21 = vector.load %arg4[%c40, %c0_10] : memref<72x512xf32, #tpu.memory_space<vmem>>, vector<8x512xf32>
    %22 = arith.mulf %20, %21 : vector<8x512xf32>
    %c497_i32 = arith.constant 497 : i32
    %23 = tpu.dynamic_rotate %0 by %c497_i32 dim 1 : vector<8x512xf32>, i32 -> vector<8x512xf32>
    %c48 = arith.constant 48 : index
    %c0_11 = arith.constant 0 : index
    %24 = vector.load %arg4[%c48, %c0_11] : memref<72x512xf32, #tpu.memory_space<vmem>>, vector<8x512xf32>
    %25 = arith.mulf %23, %24 : vector<8x512xf32>
    %c496_i32 = arith.constant 496 : i32
    %26 = tpu.dynamic_rotate %0 by %c496_i32 dim 1 : vector<8x512xf32>, i32 -> vector<8x512xf32>
    %c56 = arith.constant 56 : index
    %c0_12 = arith.constant 0 : index
    %27 = vector.load %arg4[%c56, %c0_12] : memref<72x512xf32, #tpu.memory_space<vmem>>, vector<8x512xf32>
    %28 = arith.mulf %26, %27 : vector<8x512xf32>
    %c495_i32 = arith.constant 495 : i32
    %29 = tpu.dynamic_rotate %0 by %c495_i32 dim 1 : vector<8x512xf32>, i32 -> vector<8x512xf32>
    %c64 = arith.constant 64 : index
    %c0_13 = arith.constant 0 : index
    %30 = vector.load %arg4[%c64, %c0_13] : memref<72x512xf32, #tpu.memory_space<vmem>>, vector<8x512xf32>
    %31 = arith.mulf %29, %30 : vector<8x512xf32>
    %32 = tpu.concatenate %10, %13, %16, %19, %0, %22, %25, %28, %31, %7 in 0 : vector<8x512xf32>, vector<8x512xf32>, vector<8x512xf32>, vector<8x512xf32>, vector<8x512xf32>, vector<8x512xf32>, vector<8x512xf32>, vector<8x512xf32>, vector<8x512xf32>, vector<8x512xf32> -> vector<80x512xf32>
    %c0_14 = arith.constant 0 : index
    %c0_15 = arith.constant 0 : index
    %33 = vector.load %arg1[%c0_14, %c0_15] : memref<8x80xf32, #tpu.memory_space<vmem>>, vector<8x80xf32>
    %cst = arith.constant dense<0.000000e+00> : vector<8x512xf32>
    %34 = tpu.matmul %33, %32, %cst {dimension_numbers = #tpu.dot_dimension_numbers<[1], [0], [0], [1], [0, 0, 1, 1], [], []>} : vector<8x80xf32>, vector<80x512xf32>, vector<8x512xf32> -> vector<8x512xf32>
    %c0_16 = arith.constant 0 : index
    %c0_17 = arith.constant 0 : index
    %c0_18 = arith.constant 0 : index
    %35 = vector.load %arg3[%c0_16, %c0_17, %c0_18] : memref<4x8x2xf32, #tpu.memory_space<vmem>>, vector<1x8x2xf32>
    %36 = vector.shape_cast %35 : vector<1x8x2xf32> to vector<8x2xf32>
    %c1 = arith.constant 1 : index
    %c0_19 = arith.constant 0 : index
    %c0_20 = arith.constant 0 : index
    %37 = vector.load %arg3[%c1, %c0_19, %c0_20] : memref<4x8x2xf32, #tpu.memory_space<vmem>>, vector<1x8x2xf32>
    %38 = vector.shape_cast %37 : vector<1x8x2xf32> to vector<8x2xf32>
    %cst_21 = arith.constant dense<0.000000e+00> : vector<8x2xf32>
    %39 = tpu.matmul %34, %1, %cst_21 {dimension_numbers = #tpu.dot_dimension_numbers<[1], [0], [0], [1], [0, 0, 1, 1], [], []>} : vector<8x512xf32>, vector<512x2xf32>, vector<8x2xf32> -> vector<8x2xf32>
    %cst_22 = arith.constant 3.906250e-03 : f32
    %40 = vector.broadcast %cst_22 : f32 to vector<8x2xf32>
    %41 = arith.mulf %39, %40 : vector<8x2xf32>
    %cst_23 = arith.constant dense<0.000000e+00> : vector<8x512xf32>
    %42 = tpu.matmul %41, %2, %cst_23 {dimension_numbers = #tpu.dot_dimension_numbers<[1], [0], [0], [1], [0, 0, 1, 1], [], []>} : vector<8x2xf32>, vector<2x512xf32>, vector<8x512xf32> -> vector<8x512xf32>
    %43 = arith.subf %34, %42 : vector<8x512xf32>
    %44 = arith.mulf %43, %43 : vector<8x512xf32>
    %cst_24 = arith.constant dense<0.000000e+00> : vector<8x2xf32>
    %45 = tpu.matmul %44, %1, %cst_24 {dimension_numbers = #tpu.dot_dimension_numbers<[1], [0], [0], [1], [0, 0, 1, 1], [], []>} : vector<8x512xf32>, vector<512x2xf32>, vector<8x2xf32> -> vector<8x2xf32>
    %cst_25 = arith.constant 0.00392156886 : f32
    %46 = vector.broadcast %cst_25 : f32 to vector<8x2xf32>
    %47 = arith.mulf %45, %46 : vector<8x2xf32>
    %48 = math.sqrt %47 : vector<8x2xf32>
    %cst_26 = arith.constant 9.99999974E-6 : f32
    %49 = vector.broadcast %cst_26 : f32 to vector<8x2xf32>
    %50 = arith.addf %48, %49 : vector<8x2xf32>
    %51 = tpu.reciprocal %50 {approx = true} : vector<8x2xf32> -> vector<8x2xf32>
    %52 = arith.mulf %50, %51 : vector<8x2xf32>
    %cst_27 = arith.constant 2.000000e+00 : f32
    %53 = vector.broadcast %cst_27 : f32 to vector<8x2xf32>
    %54 = arith.subf %53, %52 : vector<8x2xf32>
    %55 = arith.mulf %51, %54 : vector<8x2xf32>
    %56 = arith.mulf %36, %55 : vector<8x2xf32>
    %cst_28 = arith.constant dense<0.000000e+00> : vector<8x512xf32>
    %57 = tpu.matmul %56, %2, %cst_28 {dimension_numbers = #tpu.dot_dimension_numbers<[1], [0], [0], [1], [0, 0, 1, 1], [], []>} : vector<8x2xf32>, vector<2x512xf32>, vector<8x512xf32> -> vector<8x512xf32>
    %58 = arith.mulf %57, %43 : vector<8x512xf32>
    %cst_29 = arith.constant dense<0.000000e+00> : vector<8x512xf32>
    %59 = tpu.matmul %38, %2, %cst_29 {dimension_numbers = #tpu.dot_dimension_numbers<[1], [0], [0], [1], [0, 0, 1, 1], [], []>} : vector<8x2xf32>, vector<2x512xf32>, vector<8x512xf32> -> vector<8x512xf32>
    %60 = arith.addf %58, %59 : vector<8x512xf32>
    %cst_30 = arith.constant 0.000000e+00 : f32
    %61 = vector.broadcast %cst_30 : f32 to vector<8x512xf32>
    %62 = arith.maximumf %60, %61 : vector<8x512xf32>
    %c17_i32_31 = arith.constant 17 : i32
    %63 = tpu.dynamic_rotate %62 by %c17_i32_31 dim 1 : vector<8x512xf32>, i32 -> vector<8x512xf32>
    %c0_32 = arith.constant 0 : index
    %c0_33 = arith.constant 0 : index
    %64 = vector.load %arg4[%c0_32, %c0_33] : memref<72x512xf32, #tpu.memory_space<vmem>>, vector<8x512xf32>
    %65 = arith.mulf %63, %64 : vector<8x512xf32>
    %c16_i32_34 = arith.constant 16 : i32
    %66 = tpu.dynamic_rotate %62 by %c16_i32_34 dim 1 : vector<8x512xf32>, i32 -> vector<8x512xf32>
    %c8_35 = arith.constant 8 : index
    %c0_36 = arith.constant 0 : index
    %67 = vector.load %arg4[%c8_35, %c0_36] : memref<72x512xf32, #tpu.memory_space<vmem>>, vector<8x512xf32>
    %68 = arith.mulf %66, %67 : vector<8x512xf32>
    %c15_i32_37 = arith.constant 15 : i32
    %69 = tpu.dynamic_rotate %62 by %c15_i32_37 dim 1 : vector<8x512xf32>, i32 -> vector<8x512xf32>
    %c16_38 = arith.constant 16 : index
    %c0_39 = arith.constant 0 : index
    %70 = vector.load %arg4[%c16_38, %c0_39] : memref<72x512xf32, #tpu.memory_space<vmem>>, vector<8x512xf32>
    %71 = arith.mulf %69, %70 : vector<8x512xf32>
    %c1_i32_40 = arith.constant 1 : i32
    %72 = tpu.dynamic_rotate %62 by %c1_i32_40 dim 1 : vector<8x512xf32>, i32 -> vector<8x512xf32>
    %c24_41 = arith.constant 24 : index
    %c0_42 = arith.constant 0 : index
    %73 = vector.load %arg4[%c24_41, %c0_42] : memref<72x512xf32, #tpu.memory_space<vmem>>, vector<8x512xf32>
    %74 = arith.mulf %72, %73 : vector<8x512xf32>
    %c511_i32_43 = arith.constant 511 : i32
    %75 = tpu.dynamic_rotate %62 by %c511_i32_43 dim 1 : vector<8x512xf32>, i32 -> vector<8x512xf32>
    %c40_44 = arith.constant 40 : index
    %c0_45 = arith.constant 0 : index
    %76 = vector.load %arg4[%c40_44, %c0_45] : memref<72x512xf32, #tpu.memory_space<vmem>>, vector<8x512xf32>
    %77 = arith.mulf %75, %76 : vector<8x512xf32>
    %c497_i32_46 = arith.constant 497 : i32
    %78 = tpu.dynamic_rotate %62 by %c497_i32_46 dim 1 : vector<8x512xf32>, i32 -> vector<8x512xf32>
    %c48_47 = arith.constant 48 : index
    %c0_48 = arith.constant 0 : index
    %79 = vector.load %arg4[%c48_47, %c0_48] : memref<72x512xf32, #tpu.memory_space<vmem>>, vector<8x512xf32>
    %80 = arith.mulf %78, %79 : vector<8x512xf32>
    %c496_i32_49 = arith.constant 496 : i32
    %81 = tpu.dynamic_rotate %62 by %c496_i32_49 dim 1 : vector<8x512xf32>, i32 -> vector<8x512xf32>
    %c56_50 = arith.constant 56 : index
    %c0_51 = arith.constant 0 : index
    %82 = vector.load %arg4[%c56_50, %c0_51] : memref<72x512xf32, #tpu.memory_space<vmem>>, vector<8x512xf32>
    %83 = arith.mulf %81, %82 : vector<8x512xf32>
    %c495_i32_52 = arith.constant 495 : i32
    %84 = tpu.dynamic_rotate %62 by %c495_i32_52 dim 1 : vector<8x512xf32>, i32 -> vector<8x512xf32>
    %c64_53 = arith.constant 64 : index
    %c0_54 = arith.constant 0 : index
    %85 = vector.load %arg4[%c64_53, %c0_54] : memref<72x512xf32, #tpu.memory_space<vmem>>, vector<8x512xf32>
    %86 = arith.mulf %84, %85 : vector<8x512xf32>
    %87 = tpu.concatenate %65, %68, %71, %74, %62, %77, %80, %83, %86, %7 in 0 : vector<8x512xf32>, vector<8x512xf32>, vector<8x512xf32>, vector<8x512xf32>, vector<8x512xf32>, vector<8x512xf32>, vector<8x512xf32>, vector<8x512xf32>, vector<8x512xf32>, vector<8x512xf32> -> vector<80x512xf32>
    %c0_55 = arith.constant 0 : index
    %c0_56 = arith.constant 0 : index
    %88 = vector.load %arg2[%c0_55, %c0_56] : memref<8x80xf32, #tpu.memory_space<vmem>>, vector<8x80xf32>
    %cst_57 = arith.constant dense<0.000000e+00> : vector<8x512xf32>
    %89 = tpu.matmul %88, %87, %cst_57 {dimension_numbers = #tpu.dot_dimension_numbers<[1], [0], [0], [1], [0, 0, 1, 1], [], []>} : vector<8x80xf32>, vector<80x512xf32>, vector<8x512xf32> -> vector<8x512xf32>
    %c2 = arith.constant 2 : index
    %c0_58 = arith.constant 0 : index
    %c0_59 = arith.constant 0 : index
    %90 = vector.load %arg3[%c2, %c0_58, %c0_59] : memref<4x8x2xf32, #tpu.memory_space<vmem>>, vector<1x8x2xf32>
    %91 = vector.shape_cast %90 : vector<1x8x2xf32> to vector<8x2xf32>
    %c3 = arith.constant 3 : index
    %c0_60 = arith.constant 0 : index
    %c0_61 = arith.constant 0 : index
    %92 = vector.load %arg3[%c3, %c0_60, %c0_61] : memref<4x8x2xf32, #tpu.memory_space<vmem>>, vector<1x8x2xf32>
    %93 = vector.shape_cast %92 : vector<1x8x2xf32> to vector<8x2xf32>
    %cst_62 = arith.constant dense<0.000000e+00> : vector<8x2xf32>
    %94 = tpu.matmul %89, %1, %cst_62 {dimension_numbers = #tpu.dot_dimension_numbers<[1], [0], [0], [1], [0, 0, 1, 1], [], []>} : vector<8x512xf32>, vector<512x2xf32>, vector<8x2xf32> -> vector<8x2xf32>
    %cst_63 = arith.constant 3.906250e-03 : f32
    %95 = vector.broadcast %cst_63 : f32 to vector<8x2xf32>
    %96 = arith.mulf %94, %95 : vector<8x2xf32>
    %cst_64 = arith.constant dense<0.000000e+00> : vector<8x512xf32>
    %97 = tpu.matmul %96, %2, %cst_64 {dimension_numbers = #tpu.dot_dimension_numbers<[1], [0], [0], [1], [0, 0, 1, 1], [], []>} : vector<8x2xf32>, vector<2x512xf32>, vector<8x512xf32> -> vector<8x512xf32>
    %98 = arith.subf %89, %97 : vector<8x512xf32>
    %99 = arith.mulf %98, %98 : vector<8x512xf32>
    %cst_65 = arith.constant dense<0.000000e+00> : vector<8x2xf32>
    %100 = tpu.matmul %99, %1, %cst_65 {dimension_numbers = #tpu.dot_dimension_numbers<[1], [0], [0], [1], [0, 0, 1, 1], [], []>} : vector<8x512xf32>, vector<512x2xf32>, vector<8x2xf32> -> vector<8x2xf32>
    %cst_66 = arith.constant 0.00392156886 : f32
    %101 = vector.broadcast %cst_66 : f32 to vector<8x2xf32>
    %102 = arith.mulf %100, %101 : vector<8x2xf32>
    %103 = math.sqrt %102 : vector<8x2xf32>
    %cst_67 = arith.constant 9.99999974E-6 : f32
    %104 = vector.broadcast %cst_67 : f32 to vector<8x2xf32>
    %105 = arith.addf %103, %104 : vector<8x2xf32>
    %106 = tpu.reciprocal %105 {approx = true} : vector<8x2xf32> -> vector<8x2xf32>
    %107 = arith.mulf %105, %106 : vector<8x2xf32>
    %cst_68 = arith.constant 2.000000e+00 : f32
    %108 = vector.broadcast %cst_68 : f32 to vector<8x2xf32>
    %109 = arith.subf %108, %107 : vector<8x2xf32>
    %110 = arith.mulf %106, %109 : vector<8x2xf32>
    %111 = arith.mulf %91, %110 : vector<8x2xf32>
    %cst_69 = arith.constant dense<0.000000e+00> : vector<8x512xf32>
    %112 = tpu.matmul %111, %2, %cst_69 {dimension_numbers = #tpu.dot_dimension_numbers<[1], [0], [0], [1], [0, 0, 1, 1], [], []>} : vector<8x2xf32>, vector<2x512xf32>, vector<8x512xf32> -> vector<8x512xf32>
    %113 = arith.mulf %112, %98 : vector<8x512xf32>
    %cst_70 = arith.constant dense<0.000000e+00> : vector<8x512xf32>
    %114 = tpu.matmul %93, %2, %cst_70 {dimension_numbers = #tpu.dot_dimension_numbers<[1], [0], [0], [1], [0, 0, 1, 1], [], []>} : vector<8x2xf32>, vector<2x512xf32>, vector<8x512xf32> -> vector<8x512xf32>
    %115 = arith.addf %113, %114 : vector<8x512xf32>
    %116 = arith.addf %115, %0 : vector<8x512xf32>
    %c0_71 = arith.constant 0 : index
    %c0_72 = arith.constant 0 : index
    %117 = vector.load %arg7[%c0_71, %c0_72] : memref<8x512xf32, #tpu.memory_space<vmem>>, vector<8x512xf32>
    tpu.vector_store %arg7[%c0_71, %c0_72], %116 {strides = array<i32>} : memref<8x512xf32, #tpu.memory_space<vmem>>, vector<8x512xf32>,
    return
  }
}

</mosaic_0001>

<bundles_post_ra>
// kernel: tpu_custom_call.1
= control target key start
LH: loop header
LB: loop body
LE: loop exit
PB: predicated region body
PF: predicated region fallthrough
CT: control target
= control target key end

     0   :  { %s2971_s28 = smov 17   ;;  %s4121_s0 = inlined_call_operand.vmem [shape: f32[8,512], index: 0, kind: input, shape index: {}]   ;;  %s4122_s1 = inlined_call_operand.vmem [shape: f32[8,80], index: 1, kind: input, shape index: {}]   ;;  %s4123_s2 = inlined_call_operand.vmem [shape: f32[8,80], index: 2, kind: input, shape index: {}]   ;;  %s4124_s3 = inlined_call_operand.vmem [shape: f32[4,8,2], index: 3, kind: input, shape index: {}]   ;;  %s4125_s4 = inlined_call_operand.vmem [shape: f32[72,512], index: 4, kind: input, shape index: {}]   ;;  %s4126_s5 = inlined_call_operand.vmem [shape: f32[512,2], index: 5, kind: input, shape index: {}]   ;;  %s4127_s6 = inlined_call_operand.vmem [shape: f32[2,512], index: 6, kind: input, shape index: {}]   ;;  %s4128_s7 = inlined_call_operand.hbm [shape: f32[8,512], index: 7, kind: output, shape index: {}]  }
   0x1   :  { %v3027_v0 = vld [vmem:[%s4121_s0 + $0x10] sm:$0xff]  ;;  %v3032_v1 = vld [vmem:[%s4121_s0] sm:$0xff]  ;;  %v3041_v2 = vld [vmem:[%s4121_s0 + $0x18] sm:$0xff] }
   0x2   :  { %105 = vrot.lane.b32.xlu1 %v3027_v0, %s2971_s28  ;;  %101 = vrot.lane.b32.xlu0 %v3032_v1, %s2971_s28  ;;  %v3046_v3 = vld [vmem:[%s4121_s0 + $0x8] sm:$0xff] }
   0x6   :  { %107 = vrot.lane.b32.xlu1 %v3041_v2, %s2971_s28  ;;  %103 = vrot.lane.b32.xlu0 %v3046_v3, %s2971_s28 }
   0x7   :  { %12 = vsyncpa [#allocation3], 0  ;;  %s2972_s10 = smov 16   ;;  %s2973_s11 = smov 15   ;;  %v4131_v4 = vmov 0.0   ;;  %v96_v5 = vlaneseq  ;;  %v3120_v12 = vld [vmem:[%s4125_s4 + $0x8] sm:$0xff] }
   0x8   :  { %s2974_s12 = smov 1   ;;  %s2975_s13 = smov 127   ;;  %340 = vmatprep.mubr.f32.mxu0 %v4131_v4  ;;  %411 = vmatprep.mubr.f32.mxu1 %v4131_v4  ;;  %v3125_v13 = vld [vmem:[%s4125_s4 + $0x28] sm:$0xff]  ;;  %v3130_v16 = vld [vmem:[%s4125_s4] sm:$0xff]  ;;  %v3139_v19 = vld [vmem:[%s4125_s4 + $0x10] sm:$0xff]  ;;  %vm2980_vm9 = vmmov 1  }
   0x9   :  { %s2976_s14 = smov 113   ;;  %s2977_s15 = smov 112   ;;  %v3111_v8 = vand.u32 127, %v96_v5  ;;  %v3146_v21 = vld [vmem:[%s4125_s4 + $0x20] sm:$0xff]  ;;  %v3155_v25 = vld [vmem:[%s4125_s4 + $0x30] sm:$0xff]  ;;  %v3160_v26 = vld [vmem:[%s4125_s4 + $0x18] sm:$0xff] }
   0xa   :  { %126 = vrot.lane.b32.xlu1 %v3046_v3, %s2972_s10  ;;  %124 = vrot.lane.b32.xlu0 %v3032_v1, %s2972_s10  ;;  %s2979_s16 = smov 111   ;;  %v3165_v27 = vld [vmem:[%s4125_s4 + $0x38] sm:$0xff]  ;;  %v3184_v47 = vld [vmem:[%s4125_s4 + $0x48] sm:$0xff]  ;;  %vm272_vm11 = vcmask 654336   ;;  %vm584_vm12 = vcmask 1041408   ;;  %vm580_vm13 = vcmask 15360  }
   0xb   :  { %vm111_vm0 = vcmp.lt.s32.totalorder %v3111_v8, 17  ;;  %vm132_vm1 = vcmp.lt.s32.totalorder %v3111_v8, 16  ;;  %vm153_vm2 = vcmp.lt.s32.totalorder %v3111_v8, 15  ;;  %vm174_vm3 = vcmp.lt.s32.totalorder %v3111_v8, 1  ;;  %v3191_v49 = vld [vmem:[%s4125_s4 + $0x68] sm:$0xff]  ;;  %v3196_v52 = vld [vmem:[%s4125_s4 + $0x40] sm:$0xff] }
   0xc   :  { %v3206_v56 = vld [vmem:[%s4125_s4 + $0x50] sm:$0xff]  ;;  %v3211_v57 = vld [vmem:[%s4125_s4 + $0x58] sm:$0xff]  ;;  %v3221_v61 = vld [vmem:[%s4125_s4 + $0x60] sm:$0xff]  ;;  %vm195_vm4 = vcmp.lt.s32.totalorder %v3111_v8, 127  ;;  %vm237_vm5 = vcmp.lt.s32.totalorder %v3111_v8, 112  ;;  %vm216_vm6 = vcmp.lt.s32.totalorder %v3111_v8, 113 }
   0xd   :  { %4173 = vst [vmem:[#allocation5_spill] sm:$0xff] %v3206_v56  ;;  %v3226_v62 = vld [vmem:[%s4125_s4 + $0x70] sm:$0xff]  ;;  %v3231_v63 = vld [vmem:[%s4125_s4 + $0x78] sm:$0xff]  ;;  %vm258_vm7 = vcmp.lt.s32.totalorder %v3111_v8, 111  ;;  %v1327_v8 = vld [vmem:[%s4123_s2] sm:$0xff] }
   0xe   :  { %130 = vrot.lane.b32.xlu1 %v3041_v2, %s2972_s10  ;;  %128 = vrot.lane.b32.xlu0 %v3027_v0, %s2972_s10  ;;  %4174 = vst [vmem:[#allocation6_spill] sm:$0xff] %v3231_v63  ;;  %v41_v4 = vld [vmem:[%s4126_s5 + $0x50] sm:$0xff] }
  0x12   :  { %147 = vrot.lane.b32.xlu1 %v3046_v3, %s2973_s11  ;;  %145 = vrot.lane.b32.xlu0 %v3032_v1, %s2973_s11 }
  0x16   :  { %151 = vrot.lane.b32.xlu1 %v3041_v2, %s2973_s11  ;;  %149 = vrot.lane.b32.xlu0 %v3027_v0, %s2973_s11 }
  0x1a   :  { %168 = vrot.lane.b32.xlu1 %v3046_v3, %s2974_s12  ;;  %166 = vrot.lane.b32.xlu0 %v3032_v1, %s2974_s12 }
  0x1e   :  { %172 = vrot.lane.b32.xlu1 %v3041_v2, %s2974_s12  ;;  %170 = vrot.lane.b32.xlu0 %v3027_v0, %s2974_s12 }
  0x22   :  { %189 = vrot.lane.b32.xlu1 %v3046_v3, %s2975_s13  ;;  %187 = vrot.lane.b32.xlu0 %v3032_v1, %s2975_s13 }
  0x26   :  { %193 = vrot.lane.b32.xlu1 %v3041_v2, %s2975_s13  ;;  %191 = vrot.lane.b32.xlu0 %v3027_v0, %s2975_s13 }
  0x2a   :  { %210 = vrot.lane.b32.xlu1 %v3046_v3, %s2976_s14  ;;  %208 = vrot.lane.b32.xlu0 %v3032_v1, %s2976_s14 }
  0x2e   :  { %214 = vrot.lane.b32.xlu1 %v3041_v2, %s2976_s14  ;;  %212 = vrot.lane.b32.xlu0 %v3027_v0, %s2976_s14 }
  0x32   :  { %231 = vrot.lane.b32.xlu1 %v3046_v3, %s2977_s15  ;;  %229 = vrot.lane.b32.xlu0 %v3032_v1, %s2977_s15 }
  0x36   :  { %235 = vrot.lane.b32.xlu1 %v3041_v2, %s2977_s15  ;;  %233 = vrot.lane.b32.xlu0 %v3027_v0, %s2977_s15 }
  0x3a   :  { %252 = vrot.lane.b32.xlu1 %v3046_v3, %s2979_s16  ;;  %250 = vrot.lane.b32.xlu0 %v3032_v1, %s2979_s16 }
  0x3e   :  { %256 = vrot.lane.b32.xlu1 %v3041_v2, %s2979_s16  ;;  %254 = vrot.lane.b32.xlu0 %v3027_v0, %s2979_s16 }
  0x74   :  { %v106_v6 = vpop.permute.xlu1 %105  ;;  %v102_v7 = vpop.permute.xlu0 %101 }
  0x78   :  { %v108_v9 = vpop.permute.xlu1 %107  ;;  %v104_v10 = vpop.permute.xlu0 %103 }
  0x79   :  { %v114_v11 = vsel %vm111_vm0, %v102_v7, %v104_v10  ;;  %v115_v17 = vsel %vm111_vm0, %v108_v9, %v102_v7  ;;  %v113_v20 = vsel %vm111_vm0, %v104_v10, %v106_v6  ;;  %v112_v24 = vsel %vm111_vm0, %v106_v6, %v108_v9 }
  0x7a   :  { %v121_v22 = vmul.f32 %v3120_v12, %v114_v11  ;;  %v120_v28 = vmul.f32 %v3130_v16, %v115_v17  ;;  %v122_v32 = vmul.f32 %v3139_v19, %v113_v20  ;;  %v123_v38 = vmul.f32 %v3160_v26, %v112_v24 }
  0x7c   :  { %v127_v14 = vpop.permute.xlu1 %126  ;;  %v125_v15 = vpop.permute.xlu0 %124 }
  0x7d   :  { %v135_v18 = vsel %vm132_vm1, %v125_v15, %v127_v14 }
  0x7e   :  { %v142_v23 = vmul.f32 %v3125_v13, %v135_v18 }
  0x80   :  { %v131_v29 = vpop.permute.xlu1 %130  ;;  %v129_v30 = vpop.permute.xlu0 %128  ;;  %v2577_v31 = vpack.c.bf16 %v142_v23, %v121_v22 }
  0x81   :  { %v136_v33 = vsel %vm132_vm1, %v131_v29, %v125_v15  ;;  %v133_v34 = vsel %vm132_vm1, %v129_v30, %v131_v29  ;;  %v134_v35 = vsel %vm132_vm1, %v127_v14, %v129_v30 }
  0x82   :  { %v141_v36 = vmul.f32 %v3146_v21, %v136_v33  ;;  %v143_v37 = vmul.f32 %v3155_v25, %v134_v35  ;;  %2578 = vmatprep.subr.bf16.mxu0 %v2577_v31  ;;  %v144_v39 = vmul.f32 %v3165_v27, %v133_v34  ;;  %v3256_v34 = vld [vmem:[%s4125_s4 + $0xb8] sm:$0xff]  ;;  %v3261_v35 = vld [vmem:[%s4125_s4 + $0xa8] sm:$0xff] }
  0x83   :  { %4176 = vst [vmem:[#allocation8_spill] sm:$0xff] %v3256_v34  ;;  %4177 = vst [vmem:[#allocation9_spill] sm:$0xff] %v3261_v35 }
  0x84   :  { %v148_v40 = vpop.permute.xlu1 %147  ;;  %v146_v41 = vpop.permute.xlu0 %145  ;;  %v2579_v42 = vpack.c.bf16 %v141_v36, %v120_v28  ;;  %v2599_v43 = vpack.c.bf16 %v144_v39, %v123_v38  ;;  %v2601_v44 = vpack.c.bf16 %v143_v37, %v122_v32  ;;  %v3249_v32 = vld [vmem:[%s4125_s4 + $0xa0] sm:$0xff]  ;;  %v3266_v36 = vld [vmem:[%s4125_s4 + $0xb0] sm:$0xff] }
  0x85   :  { %v156_v48 = vsel %vm153_vm2, %v146_v41, %v148_v40  ;;  %4175 = vst [vmem:[#allocation7_spill] sm:$0xff] %v3249_v32  ;;  %4178 = vst [vmem:[#allocation10_spill] sm:$0xff] %v3266_v36 }
  0x86   :  { %2580 = vmatpush1.bf16.msra.mxu0 %v2579_v42  ;;  %2600 = vmatprep.subr.bf16.mxu1 %v2599_v43  ;;  %v163_v55 = vmul.f32 %v3184_v47, %v156_v48 }
  0x87   :  { %2602 = vmatpush1.bf16.msra.mxu1 %v2601_v44 }
  0x88   :  { %v152_v45 = vpop.permute.xlu1 %151  ;;  %v150_v46 = vpop.permute.xlu0 %149 }
  0x89   :  { %v157_v53 = vsel %vm153_vm2, %v152_v45, %v146_v41  ;;  %v155_v58 = vsel %vm153_vm2, %v148_v40, %v150_v46  ;;  %v154_v60 = vsel %vm153_vm2, %v150_v46, %v152_v45 }
  0x8a   :  { %v162_v6 = vmul.f32 %v3196_v52, %v157_v53  ;;  %v164_v11 = vmul.f32 %v3206_v56, %v155_v58  ;;  %v165_v18 = vmul.f32 %v3211_v57, %v154_v60 }
  0x8c   :  { %v169_v50 = vpop.permute.xlu1 %168  ;;  %v167_v51 = vpop.permute.xlu0 %166 }
  0x8d   :  { %v177_v54 = vsel %vm174_vm3, %v167_v51, %v169_v50 }
  0x8e   :  { %v184_v59 = vmul.f32 %v3191_v49, %v177_v54 }
  0x90   :  { %v173_v7 = vpop.permute.xlu1 %172  ;;  %v171_v9 = vpop.permute.xlu0 %170  ;;  %v2581_v10 = vpack.c.bf16 %v184_v59, %v163_v55 }
  0x91   :  { %v178_v14 = vsel %vm174_vm3, %v173_v7, %v167_v51  ;;  %v175_v15 = vsel %vm174_vm3, %v171_v9, %v173_v7  ;;  %v176_v17 = vsel %vm174_vm3, %v169_v50, %v171_v9  ;;  %v3306_v7 = vld [vmem:[%s4125_s4 + $0xe0] sm:$0xff] }
  0x92   :  { %v183_v20 = vmul.f32 %v3221_v61, %v178_v14  ;;  %v185_v22 = vmul.f32 %v3226_v62, %v176_v17  ;;  %v186_v23 = vmul.f32 %v3231_v63, %v175_v15  ;;  %2582 = vmatprep.subr.bf16.mxu0 %v2581_v10  ;;  %4182 = vst [vmem:[#allocation14_spill] sm:$0xff] %v3306_v7  ;;  %v3320_v14 = vld [vmem:[%s4125_s4 + $0xe8] sm:$0xff]  ;;  %v3325_v15 = vld [vmem:[%s4125_s4 + $0xf0] sm:$0xff]  ;;  %v3330_v17 = vld [vmem:[%s4125_s4 + $0xc0] sm:$0xff] }
  0x93   :  { %4184 = vst [vmem:[#allocation16_spill] sm:$0xff] %v3320_v14  ;;  %4185 = vst [vmem:[#allocation17_spill] sm:$0xff] %v3325_v15 }
  0x94   :  { %v190_v24 = vpop.permute.xlu1 %189  ;;  %v188_v28 = vpop.permute.xlu0 %187  ;;  %v2583_v29 = vpack.c.bf16 %v183_v20, %v162_v6  ;;  %v2603_v30 = vpack.c.bf16 %v186_v23, %v165_v18  ;;  %v2605_v31 = vpack.c.bf16 %v185_v22, %v164_v11  ;;  %v3301_v6 = vld [vmem:[%s4125_s4 + $0xd0] sm:$0xff]  ;;  %v3315_v11 = vld [vmem:[%s4125_s4 + $0xf8] sm:$0xff]  ;;  %4186 = vst [vmem:[#allocation18_spill] sm:$0xff] %v3330_v17 }
  0x95   :  { %v198_v33 = vsel %vm195_vm4, %v188_v28, %v190_v24  ;;  %4181 = vst [vmem:[#allocation13_spill] sm:$0xff] %v3301_v6  ;;  %4183 = vst [vmem:[#allocation15_spill] sm:$0xff] %v3315_v11 }
  0x96   :  { %2584 = vmatpush1.bf16.msra.mxu0 %v2583_v29  ;;  %2604 = vmatprep.subr.bf16.mxu1 %v2603_v30  ;;  %v204_v39 = vmul.f32 %v3249_v32, %v198_v33 }
  0x97   :  { %2606 = vmatpush1.bf16.msra.mxu1 %v2605_v31 }
  0x98   :  { %v194_v37 = vpop.permute.xlu1 %193  ;;  %v192_v38 = vpop.permute.xlu0 %191  ;;  %v2587_v54 = vpack.c.bf16 %v204_v39, %v3032_v1  ;;  %v3294_v1 = vld [vmem:[%s4125_s4 + $0xc8] sm:$0xff] }
  0x99   :  { %v199_v40 = vsel %vm195_vm4, %v194_v37, %v188_v28  ;;  %v196_v41 = vsel %vm195_vm4, %v192_v38, %v194_v37  ;;  %v197_v42 = vsel %vm195_vm4, %v190_v24, %v192_v38  ;;  %4180 = vst [vmem:[#allocation12_spill] sm:$0xff] %v3294_v1 }
  0x9a   :  { %v207_v43 = vmul.f32 %v3256_v34, %v199_v40  ;;  %v205_v44 = vmul.f32 %v3261_v35, %v197_v42  ;;  %v206_v45 = vmul.f32 %v3266_v36, %v196_v41 }
  0x9c   :  { %v211_v46 = vpop.permute.xlu1 %210  ;;  %v209_v48 = vpop.permute.xlu0 %208  ;;  %v2585_v50 = vpack.c.bf16 %v205_v44, %v3046_v3  ;;  %v2607_v51 = vpack.c.bf16 %v207_v43, %v3041_v2  ;;  %v2609_v53 = vpack.c.bf16 %v206_v45, %v3027_v0  ;;  %v3287_v2 = vld [vmem:[%s4125_s4 + $0xd8] sm:$0xff] }
  0x9d   :  { %4179 = vst [vmem:[#allocation11_spill] sm:$0xff] %v3287_v2  ;;  %v219_v18 = vsel %vm216_vm6, %v209_v48, %v211_v46 }
  0x9e   :  { %2586 = vmatprep.subr.bf16.mxu0 %v2585_v50  ;;  %2608 = vmatprep.subr.bf16.mxu1 %v2607_v51  ;;  %v225_v40 = vmul.f32 %v3330_v17, %v219_v18  ;;  %v3355_v50 = vld [vmem:[%s4125_s4 + $0x100] sm:$0xff] }
  0x9f   :  { %2588 = vmatpush1.bf16.msra.mxu0 %v2587_v54  ;;  %2610 = vmatpush1.bf16.msra.mxu1 %v2609_v53  ;;  %4187 = vst [vmem:[#allocation19_spill] sm:$0xff] %v3355_v50  ;;  %v3362_v53 = vld [vmem:[%s4125_s4 + $0x118] sm:$0xff]  ;;  %v3372_v54 = vld [vmem:[%s4125_s4 + $0x110] sm:$0xff]  ;;  %v79_v18 = vld [vmem:[%s4126_s5 + $0x180] sm:$0xff] }
  0xa0   :  { %v215_v55 = vpop.permute.xlu1 %214  ;;  %v213_v58 = vpop.permute.xlu0 %212  ;;  %4188 = vst [vmem:[#allocation20_spill] sm:$0xff] %v3362_v53  ;;  %4190 = vst [vmem:[#allocation22_spill] sm:$0xff] %v3372_v54 }
  0xa1   :  { %v220_v0 = vsel %vm216_vm6, %v215_v55, %v209_v48  ;;  %v218_v3 = vsel %vm216_vm6, %v211_v46, %v213_v58  ;;  %v217_v10 = vsel %vm216_vm6, %v213_v58, %v215_v55  ;;  %v3350_v46 = vshrl.u32 %v96_v5, 7  ;;  %v3367_v5 = vld [vmem:[%s4125_s4 + $0x108] sm:$0xff] }
  0xa2   :  { %v228_v20 = vmul.f32 %v3287_v2, %v220_v0  ;;  %v226_v22 = vmul.f32 %v3294_v1, %v218_v3  ;;  %v227_v33 = vmul.f32 %v3301_v6, %v217_v10  ;;  %4189 = vst [vmem:[#allocation21_spill] sm:$0xff] %v3367_v5 }
  0xa3   :  { %vm98_vm8 = vcmp.eq.s32.totalorder %v3350_v46, 0 }
  0xa4   :  { %v232_v59 = vpop.permute.xlu1 %231  ;;  %v230_v60 = vpop.permute.xlu0 %229  ;;  %vm3397_vm10 = vmpackc.low %vm98_vm8, %vm2980_vm9 }
  0xa5   :  { %v240_v9 = vsel %vm237_vm5, %v230_v60, %v232_v59 }
  0xa6   :  { %v246_v28 = vmul.f32 %v3306_v7, %v240_v9  ;;  %v95_v7 = vld [vmem:[%s4127_s6] sm:$0xff] }
  0xa7   :  { %v563_v17 = vcombine.high %v95_v7, %v95_v7 }
  0xa8   :  { %v236_v23 = vpop.permute.xlu1 %235  ;;  %v234_v24 = vpop.permute.xlu0 %233  ;;  %v2591_v48 = vpack.c.bf16 %v246_v28, %v225_v40  ;;  %v4191_v28 = vmov 0 }
  0xa9   :  { %v241_v29 = vsel %vm237_vm5, %v236_v23, %v230_v60  ;;  %v238_v30 = vsel %vm237_vm5, %v234_v24, %v236_v23  ;;  %v239_v31 = vsel %vm237_vm5, %v232_v59, %v234_v24  ;;  %v47_v59 = vld [vmem:[%s4126_s5 + $0x80] sm:$0xff]  ;;  %v48_v60 = vld [vmem:[%s4126_s5 + $0x88] sm:$0xff]  ;;  %v4192_v28 = vsel %vm3397_vm10, 4294967295, %v4191_v28 }
  0xaa   :  { %v249_v37 = vmul.f32 %v3315_v11, %v241_v29  ;;  %v247_v38 = vmul.f32 %v3320_v14, %v239_v31  ;;  %v248_v39 = vmul.f32 %v3325_v15, %v238_v30  ;;  %4193 = vst [vmem:[#allocation23_spill] sm:$0xff] %v4192_v28  ;;  %v3401_v29 = vpack.c.bf16 %v48_v60, %v47_v59  ;;  %v31_v30 = vld [vmem:[%s4126_s5] sm:$0xff]  ;;  %v32_v31 = vld [vmem:[%s4126_s5 + $0x8] sm:$0xff]  ;;  %v33_v60 = vld [vmem:[%s4126_s5 + $0x10] sm:$0xff] }
  0xab   :  { %v42_v28 = vld [vmem:[%s4126_s5 + $0x58] sm:$0xff] }
  0xac   :  { %v253_v41 = vpop.permute.xlu1 %252  ;;  %v251_v42 = vpop.permute.xlu0 %250  ;;  %v2589_v43 = vpack.c.bf16 %v247_v38, %v226_v22  ;;  %v2611_v44 = vpack.c.bf16 %v249_v37, %v228_v20  ;;  %v2613_v45 = vpack.c.bf16 %v248_v39, %v227_v33  ;;  %v80_v20 = vld [vmem:[%s4126_s5 + $0x188] sm:$0xff]  ;;  %v4129_v33 = vmov 1.0  }
  0xad   :  { %v261_v51 = vsel %vm258_vm7, %v251_v42, %v253_v41  ;;  %v3412_v40 = vpack.c.bf16 %v80_v20, %v79_v18  ;;  %v66_v18 = vld [vmem:[%s4126_s5 + $0x118] sm:$0xff]  ;;  %v51_v20 = vld [vmem:[%s4126_s5 + $0xa0] sm:$0xff] }
  0xae   :  { %2590 = vmatprep.subr.bf16.mxu0 %v2589_v43  ;;  %2612 = vmatprep.subr.bf16.mxu1 %v2611_v44  ;;  %v267_v0 = vmul.f32 %v3355_v50, %v261_v51  ;;  %v49_v43 = vld [vmem:[%s4126_s5 + $0x90] sm:$0xff]  ;;  %v82_v51 = vld [vmem:[%s4126_s5 + $0x198] sm:$0xff]  ;;  %v44_v50 = vld [vmem:[%s4126_s5 + $0x68] sm:$0xff] }
  0xaf   :  { %2592 = vmatpush1.bf16.msra.mxu0 %v2591_v48  ;;  %2614 = vmatpush1.bf16.msra.mxu1 %v2613_v45  ;;  %v50_v45 = vld [vmem:[%s4126_s5 + $0x98] sm:$0xff]  ;;  %v81_v48 = vld [vmem:[%s4126_s5 + $0x190] sm:$0xff] }
  0xb0   :  { %v257_v55 = vpop.permute.xlu1 %256  ;;  %v255_v58 = vpop.permute.xlu0 %254  ;;  %v2596_v44 = vpack.c.bf16 %v4129_v33, %v267_v0  ;;  %v34_v0 = vld [vmem:[%s4126_s5 + $0x18] sm:$0xff] }
  0xb1   :  { %v262_v3 = vsel %vm258_vm7, %v257_v55, %v251_v42  ;;  %v259_v9 = vsel %vm258_vm7, %v255_v58, %v257_v55  ;;  %v260_v10 = vsel %vm258_vm7, %v253_v41, %v255_v58  ;;  %v63_v41 = vld [vmem:[%s4126_s5 + $0x100] sm:$0xff]  ;;  %v64_v42 = vld [vmem:[%s4126_s5 + $0x108] sm:$0xff]  ;;  %v3444_v58 = vpack.c.bf16 %v32_v31, %v31_v30 }
  0xb2   :  { %v270_v22 = vmul.f32 %v3362_v53, %v262_v3  ;;  %v268_v23 = vmul.f32 %v3367_v5, %v260_v10  ;;  %v269_v24 = vmul.f32 %v3372_v54, %v259_v9  ;;  %v271_v55 = vld [vmem:[%s4122_s1] sm:$0xff]  ;;  %v3446_v59 = vpack.c.bf16 %v64_v42, %v63_v41  ;;  %v65_v10 = vld [vmem:[%s4126_s5 + $0x110] sm:$0xff] }
  0xb3   :  { %v3456_v3 = vpack.c.bf16 %v50_v45, %v49_v43  ;;  %v3458_v9 = vpack.c.bf16 %v82_v51, %v81_v48  ;;  %v3482_v30 = vpack.c.bf16 %v34_v0, %v33_v60  ;;  %v3484_v31 = vpack.c.bf16 %v66_v18, %v65_v10  ;;  %v67_v42 = vld [vmem:[%s4126_s5 + $0x120] sm:$0xff]  ;;  %v68_v43 = vld [vmem:[%s4126_s5 + $0x128] sm:$0xff]  ;;  %v54_v45 = vld [vmem:[%s4126_s5 + $0xb8] sm:$0xff] }
  0xb4   :  { %v2615_v37 = vpack.c.bf16 %v4129_v33, %v270_v22  ;;  %v2593_v38 = vpack.c.bf16 %v4129_v33, %v268_v23  ;;  %v2618_v39 = vpack.c.bf16 %v4129_v33, %v269_v24  ;;  %v52_v22 = vld [vmem:[%s4126_s5 + $0xa8] sm:$0xff]  ;;  %v83_v23 = vld [vmem:[%s4126_s5 + $0x1a0] sm:$0xff]  ;;  %v85_v48 = vld [vmem:[%s4126_s5 + $0x1b0] sm:$0xff]  ;;  %v3520_v60 = vpack.c.bf16 %v68_v43, %v67_v42 }
  0xb5   :  { %v84_v24 = vld [vmem:[%s4126_s5 + $0x1a8] sm:$0xff]  ;;  %v86_v51 = vld [vmem:[%s4126_s5 + $0x1b8] sm:$0xff]  ;;  %v37_v0 = vld [vmem:[%s4126_s5 + $0x30] sm:$0xff] }
  0xb6   :  { %2595 = vmatprep.subr.msk.bf16.mxu0 %vm3397_vm10, %v2593_v38  ;;  %2617 = vmatprep.subr.msk.bf16.mxu1 %vm3397_vm10, %v2615_v37  ;;  %v35_v37 = vld [vmem:[%s4126_s5 + $0x20] sm:$0xff]  ;;  %v36_v38 = vld [vmem:[%s4126_s5 + $0x28] sm:$0xff]  ;;  %v3496_v41 = vpack.c.bf16 %v84_v24, %v83_v23  ;;  %v38_v10 = vld [vmem:[%s4126_s5 + $0x38] sm:$0xff] }
  0xb7   :  { %2598 = vmatpush1.bf16.msk.msra.mxu0 %vm3397_vm10, %v2596_v44  ;;  %2620 = vmatpush1.bf16.msk.msra.mxu1 %vm3397_vm10, %v2618_v39  ;;  %v3494_v39 = vpack.c.bf16 %v52_v22, %v51_v20  ;;  %v53_v44 = vld [vmem:[%s4126_s5 + $0xb0] sm:$0xff]  ;;  %v3532_v20 = vpack.c.bf16 %v86_v51, %v85_v48  ;;  %v70_v23 = vld [vmem:[%s4126_s5 + $0x138] sm:$0xff]  ;;  %v55_v24 = vld [vmem:[%s4126_s5 + $0xc0] sm:$0xff]  ;;  %v3554_v43 = vpack.c.bf16 %v38_v10, %v37_v0 }
  0xb8   :  { %2622 = vmatprep.subr.bf16.mxu0 %v3401_v29  ;;  %2654 = vmatprep.subr.bf16.mxu1 %v3412_v40  ;;  %v3530_v18 = vpack.c.bf16 %v54_v45, %v53_v44  ;;  %v69_v22 = vld [vmem:[%s4126_s5 + $0x130] sm:$0xff]  ;;  %v88_v42 = vld [vmem:[%s4126_s5 + $0x1c8] sm:$0xff]  ;;  %v39_v45 = vld [vmem:[%s4126_s5 + $0x40] sm:$0xff] }
  0xb9   :  { %v3556_v44 = vpack.c.bf16 %v70_v23, %v69_v22  ;;  %v40_v48 = vld [vmem:[%s4126_s5 + $0x48] sm:$0xff]  ;;  %v71_v0 = vld [vmem:[%s4126_s5 + $0x140] sm:$0xff]  ;;  %v57_v22 = vld [vmem:[%s4126_s5 + $0xd0] sm:$0xff] }
  0xba   :  { %2248 = vmatmul.mubr.msk.f32.vlgmr.msra.gmra.mrb[0].mxu0 %vm272_vm11, %v271_v55  ;;  %2251 = vmatmul.mubr.msk.f32.vlgmr.msra.gmra.mrb[0].mxu1 %vm272_vm11, %v271_v55  ;;  %v3518_v55 = vpack.c.bf16 %v36_v38, %v35_v37  ;;  %v56_v37 = vld [vmem:[%s4126_s5 + $0xc8] sm:$0xff]  ;;  %v87_v38 = vld [vmem:[%s4126_s5 + $0x1c0] sm:$0xff]  ;;  %v58_v23 = vld [vmem:[%s4126_s5 + $0xd8] sm:$0xff] }
  0xbb   :  { %2624 = vmatpush3.bf16.msra.mxu0 %v3444_v58  ;;  %2656 = vmatpush3.bf16.msra.mxu1 %v3446_v59  ;;  %v3566_v51 = vpack.c.bf16 %v56_v37, %v55_v24  ;;  %v3568_v33 = vpack.c.bf16 %v88_v42, %v87_v38  ;;  %v72_v10 = vld [vmem:[%s4126_s5 + $0x148] sm:$0xff]  ;;  %v89_v24 = vld [vmem:[%s4126_s5 + $0x1d0] sm:$0xff]  ;;  %v90_v37 = vld [vmem:[%s4126_s5 + $0x1d8] sm:$0xff]  ;;  %v3590_v38 = vpack.c.bf16 %v40_v48, %v39_v45 }
  0xbc   :  { %2626 = vmatprep.subr.bf16.mxu0 %v3456_v3  ;;  %2658 = vmatprep.subr.bf16.mxu1 %v3458_v9  ;;  %v3592_v42 = vpack.c.bf16 %v72_v10, %v71_v0  ;;  %v3602_v53 = vpack.c.bf16 %v58_v23, %v57_v22  ;;  %v3604_v54 = vpack.c.bf16 %v90_v37, %v89_v24  ;;  %v73_v45 = vld [vmem:[%s4126_s5 + $0x150] sm:$0xff]  ;;  %v74_v48 = vld [vmem:[%s4126_s5 + $0x158] sm:$0xff]  ;;  %v59_v0 = vld [vmem:[%s4126_s5 + $0xe0] sm:$0xff] }
  0xbd   :  { %v60_v10 = vld [vmem:[%s4126_s5 + $0xe8] sm:$0xff]  ;;  %v91_v22 = vld [vmem:[%s4126_s5 + $0x1e0] sm:$0xff]  ;;  %v3626_v24 = vpack.c.bf16 %v42_v28, %v41_v4  ;;  %v3628_v37 = vpack.c.bf16 %v74_v48, %v73_v45  ;;  %v61_v45 = vld [vmem:[%s4126_s5 + $0xf0] sm:$0xff] }
  0xbe   :  { %v92_v23 = vld [vmem:[%s4126_s5 + $0x1e8] sm:$0xff]  ;;  %v43_v5 = vld [vmem:[%s4126_s5 + $0x60] sm:$0xff]  ;;  %v3638_v11 = vpack.c.bf16 %v60_v10, %v59_v0  ;;  %v62_v48 = vld [vmem:[%s4126_s5 + $0xf8] sm:$0xff] }
  0xbf   :  { %2628 = vmatpush3.bf16.msra.mxu0 %v3482_v30  ;;  %2660 = vmatpush3.bf16.msra.mxu1 %v3484_v31  ;;  %v3640_v15 = vpack.c.bf16 %v92_v23, %v91_v22  ;;  %v75_v4 = vld [vmem:[%s4126_s5 + $0x160] sm:$0xff]  ;;  %v76_v28 = vld [vmem:[%s4126_s5 + $0x168] sm:$0xff]  ;;  %v93_v0 = vld [vmem:[%s4126_s5 + $0x1f0] sm:$0xff]  ;;  %v3662_v22 = vpack.c.bf16 %v44_v50, %v43_v5  ;;  %v3668_v2 = vpack.c.bf16 %v62_v48, %v61_v45 }
  0xc0   :  { %2630 = vmatprep.subr.bf16.mxu0 %v3494_v39  ;;  %2662 = vmatprep.subr.bf16.mxu1 %v3496_v41  ;;  %v94_v10 = vld [vmem:[%s4126_s5 + $0x1f8] sm:$0xff]  ;;  %v3664_v23 = vpack.c.bf16 %v76_v28, %v75_v4  ;;  %v45_v50 = vld [vmem:[%s4126_s5 + $0x70] sm:$0xff] }
  0xc1   :  { %4194 = vst [vmem:[#allocation24_spill] sm:$0xff] %v3640_v15  ;;  %4195 = vst [vmem:[#allocation25_spill] sm:$0xff] %v3662_v22  ;;  %v3670_v6 = vpack.c.bf16 %v94_v10, %v93_v0  ;;  %v46_v5 = vld [vmem:[%s4126_s5 + $0x78] sm:$0xff]  ;;  %v77_v4 = vld [vmem:[%s4126_s5 + $0x170] sm:$0xff] }
  0xc2   :  { %4196 = vst [vmem:[#allocation26_spill] sm:$0xff] %v3664_v23  ;;  %4197 = vst [vmem:[#allocation27_spill] sm:$0xff] %v3668_v2  ;;  %v3685_v28 = vpack.c.bf16 %v46_v5, %v45_v50  ;;  %v78_v45 = vld [vmem:[%s4126_s5 + $0x178] sm:$0xff]  ;;  %v4201_v50 = vmov 0.0   ;;  %v2982_v5 = vmov 1983009808  }
  0xc3   :  { %2632 = vmatpush3.bf16.msra.mxu0 %v3518_v55  ;;  %2664 = vmatpush3.bf16.msra.mxu1 %v3520_v60  ;;  %4198 = vst [vmem:[#allocation28_spill] sm:$0xff] %v3670_v6  ;;  %v3690_v48 = vpack.c.bf16 %v78_v45, %v77_v4  ;;  %v565_v4 = vunpack.c.l.s4 %v2982_v5 }
  0xc4   :  { %2634 = vmatprep.subr.bf16.mxu0 %v3530_v18  ;;  %2666 = vmatprep.subr.bf16.mxu1 %v3532_v20  ;;  %4199 = vst [vmem:[#allocation29_spill] sm:$0xff] %v3685_v28 }
  0xc5   :  { %4200 = vst [vmem:[#allocation30_spill] sm:$0xff] %v3690_v48  ;;  %v566_v45 = vunpack.c.0.s8 %v565_v4 }
  0xc7   :  { %2636 = vmatpush3.bf16.msra.mxu0 %v3554_v43  ;;  %2668 = vmatpush3.bf16.msra.mxu1 %v3556_v44  ;;  %v569_v34 = vsub.s32 %v566_v45, %v3350_v46 }
  0xc8   :  { %2638 = vmatprep.subr.bf16.mxu0 %v3566_v51  ;;  %2670 = vmatprep.subr.bf16.mxu1 %v3568_v33 }
  0xc9   :  { %v3712_v36 = vrot.slane %v95_v7, %v569_v34  ;;  %v3714_v35 = vrot.slane %v563_v17, %v569_v34 }
  0xcb   :  { %2640 = vmatpush3.bf16.msra.mxu0 %v3590_v38  ;;  %2672 = vmatpush3.bf16.msra.mxu1 %v3592_v42  ;;  %4202 = vst [vmem:[#allocation31_spill] sm:$0xff] %v3714_v35  ;;  %v3718_v32 = vcombine.high %v3712_v36, %v3712_v36  ;;  %v3722_v56 = vcombine.high %v3714_v35, %v3714_v35 }
  0xcc   :  { %2642 = vmatprep.subr.bf16.mxu0 %v3602_v53  ;;  %2674 = vmatprep.subr.bf16.mxu1 %v3604_v54 }
  0xcd   :  { %4203 = vst [vmem:[#allocation32_spill] sm:$0xff] %v3718_v32  ;;  %4204 = vst [vmem:[#allocation33_spill] sm:$0xff] %v3722_v56 }
  0xcf   :  { %2644 = vmatpush3.bf16.msra.mxu0 %v3626_v24  ;;  %2676 = vmatpush3.bf16.msra.mxu1 %v3628_v37 }
  0xd0   :  { %2646 = vmatprep.subr.bf16.mxu0 %v3638_v11  ;;  %2678 = vmatprep.subr.bf16.mxu1 %v3640_v15 }
  0xd3   :  { %2648 = vmatpush3.bf16.msra.mxu0 %v3662_v22  ;;  %2680 = vmatpush3.bf16.msra.mxu1 %v3664_v23 }
  0xd4   :  { %2650 = vmatprep.subr.bf16.mxu0 %v3668_v2  ;;  %2682 = vmatprep.subr.bf16.mxu1 %v3670_v6 }
  0xd7   :  { %2652 = vmatpush3.bf16.msra.mxu0 %v3685_v28  ;;  %2684 = vmatpush3.bf16.msra.mxu1 %v3690_v48 }
  0xd8   :  { %2253 = vmatprep.subr.msk.mxu0 %vm584_vm12, %v3718_v32  ;;  %2256 = vmatprep.subr.msk.mxu1 %vm584_vm12, %v3722_v56 }
 0x18d   :  { %v3694_v0 = vpop.f32.mrb[0].mxu0  ;;  %v3696_v10 = vpop.f32.mrb[0].mxu1 }
 0x18e   :  { %v3698_v14 = vpop.f32.mrb[1].mxu0  ;;  %v3700_v1 = vpop.f32.mrb[1].mxu1 }
 0x18f   :  { %485 = vmatprep.mubr.f32.mxu0 %v3698_v14  ;;  %555 = vmatprep.mubr.f32.mxu1 %v3700_v1 }
 0x190   :  { %486 = vmatmul.mubr.f32.vlgmr.msra.gmra.mrb[2].mxu0 %v3694_v0  ;;  %556 = vmatmul.mubr.f32.vlgmr.msra.gmra.mrb[2].mxu1 %v3696_v10 }
 0x191   :  { %657 = vmatprep.mubr.f32.mxu0 %v4201_v50  ;;  %728 = vmatprep.mubr.f32.mxu1 %v4201_v50 }
 0x192   :  { %2254 = vmatpush1.msk.msra.mxu0 %vm584_vm12, %v3712_v36  ;;  %2257 = vmatpush1.msk.msra.mxu1 %vm584_vm12, %v3714_v35 }
 0x193   :  { %2686 = vmatprep.subr.bf16.mxu0 %v3401_v29  ;;  %2718 = vmatprep.subr.bf16.mxu1 %v3412_v40 }
 0x263   :  { %v2329_v34 = vpop.f32.mrb[2].mxu0  ;;  %v2364_v7 = vpop.f32.mrb[2].mxu1 }
 0x264   :  { %v2330_v17 = vpop.f32.mrb[3].mxu0  ;;  %v2365_v46 = vpop.f32.mrb[3].mxu1 }
 0x265   :  { %v2331_v5 = vadd.f32 %v2330_v17, %v2329_v34  ;;  %v2366_v4 = vadd.f32 %v2365_v46, %v2364_v7 }
 0x267   :  { %v558_v45 = vadd.f32 %v2366_v4, %v2331_v5 }
 0x269   :  { %v561_v63 = vmul.f32 0.00390625, %v558_v45 }
 0x26b   :  { %2255 = vmatmul.mubr.msk.f32.vlgmr.msra.gmra.mrb[4].mxu0 %vm580_vm13, %v561_v63  ;;  %2258 = vmatmul.mubr.msk.f32.vlgmr.msra.gmra.mrb[4].mxu1 %vm580_vm13, %v561_v63 }
 0x26c   :  { %2688 = vmatpush3.bf16.msra.mxu0 %v3444_v58  ;;  %2720 = vmatpush3.bf16.msra.mxu1 %v3446_v59 }
 0x26d   :  { %2690 = vmatprep.subr.bf16.mxu0 %v3456_v3  ;;  %2722 = vmatprep.subr.bf16.mxu1 %v3458_v9 }
 0x270   :  { %2692 = vmatpush3.bf16.msra.mxu0 %v3482_v30  ;;  %2724 = vmatpush3.bf16.msra.mxu1 %v3484_v31 }
 0x271   :  { %2694 = vmatprep.subr.bf16.mxu0 %v3494_v39  ;;  %2726 = vmatprep.subr.bf16.mxu1 %v3496_v41 }
 0x274   :  { %2696 = vmatpush3.bf16.msra.mxu0 %v3518_v55  ;;  %2728 = vmatpush3.bf16.msra.mxu1 %v3520_v60 }
 0x275   :  { %2698 = vmatprep.subr.bf16.mxu0 %v3530_v18  ;;  %2730 = vmatprep.subr.bf16.mxu1 %v3532_v20 }
 0x278   :  { %2700 = vmatpush3.bf16.msra.mxu0 %v3554_v43  ;;  %2732 = vmatpush3.bf16.msra.mxu1 %v3556_v44 }
 0x279   :  { %2702 = vmatprep.subr.bf16.mxu0 %v3566_v51  ;;  %2734 = vmatprep.subr.bf16.mxu1 %v3568_v33 }
 0x27c   :  { %2704 = vmatpush3.bf16.msra.mxu0 %v3590_v38  ;;  %2736 = vmatpush3.bf16.msra.mxu1 %v3592_v42 }
 0x27d   :  { %2706 = vmatprep.subr.bf16.mxu0 %v3602_v53  ;;  %2738 = vmatprep.subr.bf16.mxu1 %v3604_v54 }
 0x280   :  { %2708 = vmatpush3.bf16.msra.mxu0 %v3626_v24  ;;  %2740 = vmatpush3.bf16.msra.mxu1 %v3628_v37 }
 0x281   :  { %2710 = vmatprep.subr.bf16.mxu0 %v3638_v11  ;;  %2742 = vmatprep.subr.bf16.mxu1 %v3640_v15 }
 0x284   :  { %2712 = vmatpush3.bf16.msra.mxu0 %v3662_v22  ;;  %2744 = vmatpush3.bf16.msra.mxu1 %v3664_v23 }
 0x285   :  { %2714 = vmatprep.subr.bf16.mxu0 %v3668_v2  ;;  %2746 = vmatprep.subr.bf16.mxu1 %v3670_v6 }
 0x288   :  { %2716 = vmatpush3.bf16.msra.mxu0 %v3685_v28  ;;  %2748 = vmatpush3.bf16.msra.mxu1 %v3690_v48 }
 0x289   :  { %2259 = vmatprep.subr.msk.mxu0 %vm584_vm12, %v3718_v32  ;;  %2262 = vmatprep.subr.msk.mxu1 %vm584_vm12, %v3722_v56 }
 0x33e   :  { %v659_v63 = vpop.f32.mrb[4].mxu0  ;;  %v730_v34 = vpop.f32.mrb[4].mxu1 }
 0x33f   :  { %v735_v7 = vsub.f32 %v3694_v0, %v659_v63  ;;  %v737_v17 = vsub.f32 %v3696_v10, %v730_v34  ;;  %v661_v46 = vpop.f32.mrb[5].mxu0  ;;  %v732_v5 = vpop.f32.mrb[5].mxu1 }
 0x340   :  { %v736_v4 = vsub.f32 %v3698_v14, %v661_v46  ;;  %v738_v45 = vsub.f32 %v3700_v1, %v732_v5 }
 0x341   :  { %v739_v6 = vmul.f32 %v735_v7, %v735_v7  ;;  %v741_v2 = vmul.f32 %v737_v17, %v737_v17 }
 0x342   :  { %v740_v28 = vmul.f32 %v736_v4, %v736_v4  ;;  %v742_v48 = vmul.f32 %v738_v45, %v738_v45 }
 0x344   :  { %807 = vmatprep.mubr.f32.mxu0 %v740_v28  ;;  %877 = vmatprep.mubr.f32.mxu1 %v742_v48 }
 0x345   :  { %808 = vmatmul.mubr.f32.vlgmr.msra.gmra.mrb[6].mxu0 %v739_v6  ;;  %878 = vmatmul.mubr.f32.vlgmr.msra.gmra.mrb[6].mxu1 %v741_v2 }
 0x346   :  { %2260 = vmatpush1.msk.msra.mxu0 %vm584_vm12, %v3712_v36  ;;  %964 = vmatprep.mubr.f32.mxu0 %v4201_v50 }
 0x347   :  { %2263 = vmatpush1.msk.msra.mxu1 %vm584_vm12, %v3714_v35  ;;  %1035 = vmatprep.mubr.f32.mxu1 %v4201_v50 }
 0x348   :  { %2265 = vmatprep.subr.msk.mxu0 %vm584_vm12, %v3718_v32  ;;  %2268 = vmatprep.subr.msk.mxu1 %vm584_vm12, %v3722_v56 }
 0x418   :  { %v2399_v1 = vpop.f32.mrb[6].mxu0  ;;  %v2434_v14 = vpop.f32.mrb[6].mxu1 }
 0x419   :  { %v2400_v6 = vpop.f32.mrb[7].mxu0  ;;  %v2435_v2 = vpop.f32.mrb[7].mxu1 }
 0x41a   :  { %v2401_v28 = vadd.f32 %v2400_v6, %v2399_v1  ;;  %v2436_v48 = vadd.f32 %v2435_v2, %v2434_v14  ;;  %v418_v1 = vld [vmem:[%s4124_s3] sm:$0xff] }
 0x41c   :  { %v880_v0 = vadd.f32 %v2436_v48, %v2401_v28 }
 0x41e   :  { %v883_v10 = vmul.f32 0.003921569, %v880_v0 }
 0x420   :  { %2935 = vrsqrt.f32 %v883_v10  ;;  %vm886_vm14 = vcmp.eq.f32.partialorder %v883_v10, inf  ;;  %v889_v46 = vand.u32 2147483648, %v883_v10  ;;  %vm888_vm15 = vcmp.eq.f32.partialorder %v883_v10, 0.0 }
 0x42a   :  { %v2936_v63 = vpop.eup %2935 }
 0x42b   :  { %v885_v34 = vmul.f32 %v2936_v63, %v883_v10 }
 0x42d   :  { %v887_v5 = vsel %vm886_vm14, %v883_v10, %v885_v34 }
 0x42e   :  { %v890_v23 = vsel %vm888_vm15, %v889_v46, %v887_v5 }
 0x42f   :  { %v891_v32 = vadd.f32 1e-05, %v890_v23 }
 0x431   :  { %2937 = vrcp.f32 %v891_v32 }
 0x43b   :  { %v2938_v22 = vpop.eup %2937 }
 0x43c   :  { %v893_v56 = vmul.f32 %v2938_v22, %v891_v32  ;;  %v2252_v32 = vld [vmem:[%s4124_s3 + $0x8] sm:$0xff] }
 0x43e   :  { %v894_v15 = vsub.f32 2.0, %v893_v56 }
 0x440   :  { %v895_v14 = vmul.f32 %v2938_v22, %v894_v15 }
 0x442   :  { %v896_v6 = vmul.f32 %v895_v14, %v418_v1 }
 0x444   :  { %2261 = vmatmul.mubr.msk.f32.vlgmr.msra.gmra.mrb[8].mxu0 %vm580_vm13, %v896_v6  ;;  %2264 = vmatmul.mubr.msk.f32.vlgmr.msra.gmra.mrb[8].mxu1 %vm580_vm13, %v896_v6 }
 0x445   :  { %2266 = vmatpush1.msk.msra.mxu0 %vm584_vm12, %v3712_v36  ;;  %1113 = vmatprep.mubr.f32.mxu0 %v4201_v50 }
 0x446   :  { %2269 = vmatpush1.msk.msra.mxu1 %vm584_vm12, %v3714_v35  ;;  %1184 = vmatprep.mubr.f32.mxu1 %v4201_v50 }
 0x448   :  { %2267 = vmatmul.mubr.msk.f32.vlgmr.msra.gmra.mrb[10].mxu0 %vm580_vm13, %v2252_v32  ;;  %2270 = vmatmul.mubr.msk.f32.vlgmr.msra.gmra.mrb[10].mxu1 %vm580_vm13, %v2252_v32 }
 0x449   :  { %1395 = vmatprep.mubr.f32.mxu0 %v4201_v50  ;;  %1466 = vmatprep.mubr.f32.mxu1 %v4201_v50 }
 0x517   :  { %v966_v56 = vpop.f32.mrb[8].mxu0  ;;  %v1037_v15 = vpop.f32.mrb[8].mxu1 }
 0x518   :  { %v968_v22 = vpop.f32.mrb[9].mxu0  ;;  %v1039_v23 = vpop.f32.mrb[9].mxu1  ;;  %v1042_v2 = vmul.f32 %v966_v56, %v735_v7  ;;  %v1044_v28 = vmul.f32 %v1037_v15, %v737_v17 }
 0x519   :  { %v1043_v48 = vmul.f32 %v968_v22, %v736_v4  ;;  %v1045_v0 = vmul.f32 %v1039_v23, %v738_v45 }
 0x51b   :  { %v1115_v10 = vpop.f32.mrb[10].mxu0  ;;  %v1186_v63 = vpop.f32.mrb[10].mxu1 }
 0x51c   :  { %v1191_v34 = vadd.f32 %v1115_v10, %v1042_v2  ;;  %v1193_v46 = vadd.f32 %v1186_v63, %v1044_v28  ;;  %v1117_v5 = vpop.f32.mrb[11].mxu0  ;;  %v1188_v1 = vpop.f32.mrb[11].mxu1 }
 0x51d   :  { %v1192_v14 = vadd.f32 %v1117_v5, %v1043_v48  ;;  %v1194_v6 = vadd.f32 %v1188_v1, %v1045_v0 }
 0x51e   :  { %v3802_v32 = vmax.f32 %v1191_v34, 0.0  ;;  %v3810_v7 = vmax.f32 %v1193_v46, 0.0 }
 0x51f   :  { %v3804_v35 = vmax.f32 %v1192_v14, 0.0  ;;  %v3812_v17 = vmax.f32 %v1194_v6, 0.0 }
 0x520   :  { %1199 = vrot.lane.b32.xlu0 %v3802_v32, %s2971_s28 }
 0x521   :  { %1201 = vrot.lane.b32.xlu1 %v3804_v35, %s2971_s28 }
 0x524   :  { %1203 = vrot.lane.b32.xlu0 %v3810_v7, %s2971_s28 }
 0x525   :  { %1205 = vrot.lane.b32.xlu1 %v3812_v17, %s2971_s28 }
 0x528   :  { %1215 = vrot.lane.b32.xlu0 %v3802_v32, %s2972_s10 }
 0x529   :  { %1217 = vrot.lane.b32.xlu1 %v3804_v35, %s2972_s10 }
 0x52c   :  { %1219 = vrot.lane.b32.xlu0 %v3810_v7, %s2972_s10 }
 0x52d   :  { %1221 = vrot.lane.b32.xlu1 %v3812_v17, %s2972_s10 }
 0x530   :  { %1231 = vrot.lane.b32.xlu0 %v3802_v32, %s2973_s11 }
 0x531   :  { %1233 = vrot.lane.b32.xlu1 %v3804_v35, %s2973_s11 }
 0x534   :  { %1235 = vrot.lane.b32.xlu0 %v3810_v7, %s2973_s11 }
 0x535   :  { %1237 = vrot.lane.b32.xlu1 %v3812_v17, %s2973_s11 }
 0x538   :  { %1247 = vrot.lane.b32.xlu0 %v3802_v32, %s2974_s12 }
 0x539   :  { %1249 = vrot.lane.b32.xlu1 %v3804_v35, %s2974_s12 }
 0x53c   :  { %1251 = vrot.lane.b32.xlu0 %v3810_v7, %s2974_s12 }
 0x53d   :  { %1253 = vrot.lane.b32.xlu1 %v3812_v17, %s2974_s12 }
 0x540   :  { %1263 = vrot.lane.b32.xlu0 %v3802_v32, %s2975_s13 }
 0x541   :  { %1265 = vrot.lane.b32.xlu1 %v3804_v35, %s2975_s13 }
 0x544   :  { %1267 = vrot.lane.b32.xlu0 %v3810_v7, %s2975_s13 }
 0x545   :  { %1269 = vrot.lane.b32.xlu1 %v3812_v17, %s2975_s13 }
 0x548   :  { %1279 = vrot.lane.b32.xlu0 %v3802_v32, %s2976_s14 }
 0x549   :  { %1281 = vrot.lane.b32.xlu1 %v3804_v35, %s2976_s14 }
 0x54c   :  { %1283 = vrot.lane.b32.xlu0 %v3810_v7, %s2976_s14 }
 0x54d   :  { %1285 = vrot.lane.b32.xlu1 %v3812_v17, %s2976_s14 }
 0x550   :  { %1295 = vrot.lane.b32.xlu0 %v3802_v32, %s2977_s15 }
 0x551   :  { %1297 = vrot.lane.b32.xlu1 %v3804_v35, %s2977_s15 }
 0x554   :  { %1299 = vrot.lane.b32.xlu0 %v3810_v7, %s2977_s15 }
 0x555   :  { %1301 = vrot.lane.b32.xlu1 %v3812_v17, %s2977_s15 }
 0x558   :  { %1311 = vrot.lane.b32.xlu0 %v3802_v32, %s2979_s16 }
 0x559   :  { %1313 = vrot.lane.b32.xlu1 %v3804_v35, %s2979_s16 }
 0x55c   :  { %1315 = vrot.lane.b32.xlu0 %v3810_v7, %s2979_s16 }
 0x55d   :  { %1317 = vrot.lane.b32.xlu1 %v3812_v17, %s2979_s16 }
 0x592   :  { %v1200_v4 = vpop.permute.xlu0 %1199 }
 0x593   :  { %v1202_v45 = vpop.permute.xlu1 %1201 }
 0x594   :  { %v1209_v22 = vsel %vm111_vm0, %v1200_v4, %v1202_v45 }
 0x595   :  { %v1212_v48 = vmul.f32 %v1209_v22, %v3120_v12 }
 0x596   :  { %v1204_v56 = vpop.permute.xlu0 %1203 }
 0x597   :  { %v1206_v15 = vpop.permute.xlu1 %1205  ;;  %v1208_v46 = vsel %vm111_vm0, %v1202_v45, %v1204_v56 }
 0x598   :  { %v1207_v10 = vsel %vm111_vm0, %v1204_v56, %v1206_v15  ;;  %v1210_v63 = vsel %vm111_vm0, %v1206_v15, %v1200_v4  ;;  %v1213_v56 = vmul.f32 %v1208_v46, %v3139_v19 }
 0x599   :  { %v1211_v22 = vmul.f32 %v1210_v63, %v3130_v16  ;;  %v1214_v4 = vmul.f32 %v1207_v10, %v3160_v26 }
 0x59a   :  { %v1216_v23 = vpop.permute.xlu0 %1215 }
 0x59b   :  { %v1218_v2 = vpop.permute.xlu1 %1217 }
 0x59c   :  { %v1225_v28 = vsel %vm132_vm1, %v1216_v23, %v1218_v2 }
 0x59d   :  { %v1228_v0 = vmul.f32 %v1225_v28, %v3125_v13 }
 0x59e   :  { %v1220_v34 = vpop.permute.xlu0 %1219 }
 0x59f   :  { %v1224_v5 = vsel %vm132_vm1, %v1218_v2, %v1220_v34  ;;  %v1222_v1 = vpop.permute.xlu1 %1221  ;;  %v2749_v14 = vpack.c.bf16 %v1228_v0, %v1212_v48 }
 0x5a0   :  { %v1229_v6 = vmul.f32 %v1224_v5, %v3155_v25  ;;  %v1223_v12 = vsel %vm132_vm1, %v1220_v34, %v1222_v1  ;;  %v1226_v13 = vsel %vm132_vm1, %v1222_v1, %v1216_v23 }
 0x5a1   :  { %v1227_v15 = vmul.f32 %v1226_v13, %v3146_v21  ;;  %v1230_v45 = vmul.f32 %v1223_v12, %v3165_v27  ;;  %2750 = vmatprep.subr.bf16.mxu0 %v2749_v14 }
 0x5a2   :  { %v1232_v2 = vpop.permute.xlu0 %1231  ;;  %v2773_v0 = vpack.c.bf16 %v1229_v6, %v1213_v56 }
 0x5a3   :  { %v2751_v28 = vpack.c.bf16 %v1227_v15, %v1211_v22  ;;  %v1234_v25 = vpop.permute.xlu1 %1233  ;;  %v2771_v48 = vpack.c.bf16 %v1230_v45, %v1214_v4  ;;  %v4205_v45 = vld [vmem:[#allocation6_spill] sm:$0xff] }
 0x5a4   :  { %v1241_v16 = vsel %vm153_vm2, %v1232_v2, %v1234_v25 }
 0x5a5   :  { %2752 = vmatpush1.bf16.msra.mxu0 %v2751_v28  ;;  %2772 = vmatprep.subr.bf16.mxu1 %v2771_v48  ;;  %v1244_v19 = vmul.f32 %v1241_v16, %v3184_v47 }
 0x5a6   :  { %v1236_v34 = vpop.permute.xlu0 %1235  ;;  %2774 = vmatpush1.bf16.msra.mxu1 %v2773_v0 }
 0x5a7   :  { %v1238_v23 = vpop.permute.xlu1 %1237  ;;  %v1240_v1 = vsel %vm153_vm2, %v1234_v25, %v1236_v34 }
 0x5a8   :  { %v1239_v63 = vsel %vm153_vm2, %v1236_v34, %v1238_v23  ;;  %v1242_v46 = vsel %vm153_vm2, %v1238_v23, %v1232_v2  ;;  %v4206_v2 = vld [vmem:[#allocation5_spill] sm:$0xff] }
 0x5a9   :  { %v1243_v22 = vmul.f32 %v1242_v46, %v3196_v52  ;;  %v1246_v4 = vmul.f32 %v1239_v63, %v3211_v57  ;;  %v1245_v28 = vmul.f32 %v1240_v1, %v4206_v2  ;;  %v4207_v57 = vld [vmem:[#allocation7_spill] sm:$0xff]  ;;  %v4209_v63 = vld [vmem:[#allocation10_spill] sm:$0xff] }
 0x5aa   :  { %v1248_v26 = vpop.permute.xlu0 %1247 }
 0x5ab   :  { %v1250_v21 = vpop.permute.xlu1 %1249 }
 0x5ac   :  { %v1257_v27 = vsel %vm174_vm3, %v1248_v26, %v1250_v21 }
 0x5ad   :  { %v1260_v10 = vmul.f32 %v1257_v27, %v3191_v49 }
 0x5ae   :  { %v1252_v5 = vpop.permute.xlu0 %1251 }
 0x5af   :  { %v1256_v14 = vsel %vm174_vm3, %v1250_v21, %v1252_v5  ;;  %v1254_v6 = vpop.permute.xlu1 %1253  ;;  %v2753_v12 = vpack.c.bf16 %v1260_v10, %v1244_v19  ;;  %v4208_v21 = vld [vmem:[#allocation9_spill] sm:$0xff] }
 0x5b0   :  { %v1261_v13 = vmul.f32 %v1256_v14, %v3226_v62  ;;  %v1255_v47 = vsel %vm174_vm3, %v1252_v5, %v1254_v6  ;;  %v1258_v49 = vsel %vm174_vm3, %v1254_v6, %v1248_v26  ;;  %v4210_v5 = vld [vmem:[#allocation8_spill] sm:$0xff] }
 0x5b1   :  { %v1259_v15 = vmul.f32 %v1258_v49, %v3221_v61  ;;  %v1262_v56 = vmul.f32 %v1255_v47, %v4205_v45  ;;  %2754 = vmatprep.subr.bf16.mxu0 %v2753_v12 }
 0x5b2   :  { %v1264_v25 = vpop.permute.xlu0 %1263  ;;  %v2777_v34 = vpack.c.bf16 %v1261_v13, %v1245_v28  ;;  %v4211_v28 = vld [vmem:[#allocation18_spill] sm:$0xff] }
 0x5b3   :  { %v2755_v48 = vpack.c.bf16 %v1259_v15, %v1243_v22  ;;  %v1266_v62 = vpop.permute.xlu1 %1265  ;;  %v2775_v0 = vpack.c.bf16 %v1262_v56, %v1246_v4 }
 0x5b4   :  { %v1273_v23 = vsel %vm195_vm4, %v1264_v25, %v1266_v62 }
 0x5b5   :  { %2756 = vmatpush1.bf16.msra.mxu0 %v2755_v48  ;;  %2776 = vmatprep.subr.bf16.mxu1 %v2775_v0  ;;  %v1275_v16 = vmul.f32 %v1273_v23, %v4207_v57  ;;  %v4212_v48 = vld [vmem:[#allocation14_spill] sm:$0xff]  ;;  %v4213_v23 = vld [vmem:[#allocation12_spill] sm:$0xff] }
 0x5b6   :  { %v1268_v52 = vpop.permute.xlu0 %1267  ;;  %2778 = vmatpush1.bf16.msra.mxu1 %v2777_v34  ;;  %v4214_v57 = vld [vmem:[#allocation16_spill] sm:$0xff] }
 0x5b7   :  { %v1272_v61 = vsel %vm195_vm4, %v1266_v62, %v1268_v52  ;;  %v1270_v26 = vpop.permute.xlu1 %1269  ;;  %v2759_v12 = vpack.c.bf16 %v1275_v16, %v3802_v32 }
 0x5b8   :  { %v1276_v27 = vmul.f32 %v1272_v61, %v4208_v21  ;;  %v1271_v19 = vsel %vm195_vm4, %v1268_v52, %v1270_v26  ;;  %v1274_v10 = vsel %vm195_vm4, %v1270_v26, %v1264_v25  ;;  %v4215_v21 = vld [vmem:[#allocation13_spill] sm:$0xff] }
 0x5b9   :  { %v1277_v46 = vmul.f32 %v1271_v19, %v4209_v63  ;;  %v1278_v1 = vmul.f32 %v1274_v10, %v4210_v5  ;;  %v4216_v19 = vld [vmem:[#allocation11_spill] sm:$0xff]  ;;  %v4217_v63 = vld [vmem:[#allocation17_spill] sm:$0xff] }
 0x5ba   :  { %v1280_v14 = vpop.permute.xlu0 %1279  ;;  %v2757_v6 = vpack.c.bf16 %v1276_v27, %v3804_v35  ;;  %v4218_v5 = vld [vmem:[#allocation15_spill] sm:$0xff] }
 0x5bb   :  { %v2781_v13 = vpack.c.bf16 %v1277_v46, %v3810_v7  ;;  %v1282_v47 = vpop.permute.xlu1 %1281  ;;  %v2779_v49 = vpack.c.bf16 %v1278_v1, %v3812_v17 }
 0x5bc   :  { %2758 = vmatprep.subr.bf16.mxu0 %v2757_v6  ;;  %v1289_v56 = vsel %vm216_vm6, %v1280_v14, %v1282_v47 }
 0x5bd   :  { %2760 = vmatpush1.bf16.msra.mxu0 %v2759_v12  ;;  %2780 = vmatprep.subr.bf16.mxu1 %v2779_v49  ;;  %v1291_v25 = vmul.f32 %v1289_v56, %v4211_v28  ;;  %v4221_v28 = vld [vmem:[#allocation22_spill] sm:$0xff] }
 0x5be   :  { %v1284_v22 = vpop.permute.xlu0 %1283  ;;  %2782 = vmatpush1.bf16.msra.mxu1 %v2781_v13 }
 0x5bf   :  { %v1286_v4 = vpop.permute.xlu1 %1285  ;;  %v1288_v32 = vsel %vm216_vm6, %v1282_v47, %v1284_v22 }
 0x5c0   :  { %v1287_v7 = vsel %vm216_vm6, %v1284_v22, %v1286_v4  ;;  %v1290_v17 = vsel %vm216_vm6, %v1286_v4, %v1280_v14  ;;  %v1292_v52 = vmul.f32 %v1288_v32, %v4213_v23  ;;  %v4220_v32 = vld [vmem:[#allocation21_spill] sm:$0xff] }
 0x5c1   :  { %v1293_v27 = vmul.f32 %v1287_v7, %v4215_v21  ;;  %v1294_v10 = vmul.f32 %v1290_v17, %v4216_v19  ;;  %v4227_v21 = vld [vmem:[#allocation26_spill] sm:$0xff]  ;;  %v4229_v19 = vld [vmem:[#allocation28_spill] sm:$0xff] }
 0x5c2   :  { %v1296_v15 = vpop.permute.xlu0 %1295 }
 0x5c3   :  { %v1298_v45 = vpop.permute.xlu1 %1297 }
 0x5c4   :  { %v1305_v35 = vsel %vm237_vm5, %v1296_v15, %v1298_v45 }
 0x5c5   :  { %v1307_v62 = vmul.f32 %v1305_v35, %v4212_v48  ;;  %v4222_v48 = vld [vmem:[#allocation20_spill] sm:$0xff] }
 0x5c6   :  { %v1300_v2 = vpop.permute.xlu0 %1299 }
 0x5c7   :  { %v1304_v0 = vsel %vm237_vm5, %v1298_v45, %v1300_v2  ;;  %v1302_v34 = vpop.permute.xlu1 %1301  ;;  %v2763_v12 = vpack.c.bf16 %v1307_v62, %v1291_v25 }
 0x5c8   :  { %v1308_v16 = vmul.f32 %v1304_v0, %v4214_v57  ;;  %v1303_v61 = vsel %vm237_vm5, %v1300_v2, %v1302_v34  ;;  %v1306_v26 = vsel %vm237_vm5, %v1302_v34, %v1296_v15  ;;  %v4219_v15 = vld [vmem:[#allocation19_spill] sm:$0xff]  ;;  %v4223_v0 = vmov 1.0  }
 0x5c9   :  { %v1309_v46 = vmul.f32 %v1303_v61, %v4217_v63  ;;  %v1310_v1 = vmul.f32 %v1306_v26, %v4218_v5  ;;  %v4225_v61 = vld [vmem:[#allocation24_spill] sm:$0xff]  ;;  %v4226_v26 = vld [vmem:[#allocation25_spill] sm:$0xff]  ;;  %v4231_v63 = vld [vmem:[#allocation30_spill] sm:$0xff] }
 0x5ca   :  { %v1312_v14 = vpop.permute.xlu0 %1311  ;;  %v2761_v6 = vpack.c.bf16 %v1308_v16, %v1292_v52  ;;  %v4233_v5 = vld [vmem:[#allocation33_spill] sm:$0xff] }
 0x5cb   :  { %v2785_v13 = vpack.c.bf16 %v1309_v46, %v1293_v27  ;;  %v1314_v47 = vpop.permute.xlu1 %1313  ;;  %v2783_v49 = vpack.c.bf16 %v1310_v1, %v1294_v10  ;;  %v4228_v27 = vld [vmem:[#allocation27_spill] sm:$0xff]  ;;  %v4230_v10 = vld [vmem:[#allocation29_spill] sm:$0xff]  ;;  %v4232_v46 = vld [vmem:[#allocation32_spill] sm:$0xff] }
 0x5cc   :  { %v1321_v22 = vsel %vm258_vm7, %v1312_v14, %v1314_v47  ;;  %2762 = vmatprep.subr.bf16.mxu0 %v2761_v6 }
 0x5cd   :  { %2764 = vmatpush1.bf16.msra.mxu0 %v2763_v12  ;;  %2784 = vmatprep.subr.bf16.mxu1 %v2783_v49  ;;  %v1323_v45 = vmul.f32 %v1321_v22, %v4219_v15 }
 0x5ce   :  { %v1316_v4 = vpop.permute.xlu0 %1315  ;;  %2786 = vmatpush1.bf16.msra.mxu1 %v2785_v13  ;;  %v4234_v13 = vld [vmem:[#allocation31_spill] sm:$0xff] }
 0x5cf   :  { %v1320_v56 = vsel %vm258_vm7, %v1314_v47, %v1316_v4  ;;  %v1318_v35 = vpop.permute.xlu1 %1317  ;;  %v2768_v23 = vpack.c.bf16 %v4223_v0, %v1323_v45 }
 0x5d0   :  { %v1324_v7 = vmul.f32 %v1320_v56, %v4220_v32  ;;  %v1319_v17 = vsel %vm258_vm7, %v1316_v4, %v1318_v35  ;;  %v1322_v2 = vsel %vm258_vm7, %v1318_v35, %v1312_v14 }
 0x5d1   :  { %v1325_v25 = vmul.f32 %v1319_v17, %v4221_v28  ;;  %v1326_v62 = vmul.f32 %v1322_v2, %v4222_v48  ;;  %v2277_v28 = vld [vmem:[%s4124_s3 + $0x10] sm:$0xff] }
 0x5d2   :  { %v2765_v34 = vpack.c.bf16 %v4223_v0, %v1324_v7 }
 0x5d3   :  { %v2787_v52 = vpack.c.bf16 %v4223_v0, %v1326_v62  ;;  %v2790_v57 = vpack.c.bf16 %v4223_v0, %v1325_v25  ;;  %v2278_v62 = vld [vmem:[%s4124_s3 + $0x18] sm:$0xff]  ;;  %s2983_s3 = smov [#allocation2]  }
 0x5d4   :  { %2767 = vmatprep.subr.msk.bf16.mxu0 %vm3397_vm10, %v2765_v34  ;;  %s2237_s14 = sshll.u32 %s2983_s3, 4  ;;  %s2238_s14 = int_to_ptr.vmem [resolvable:$true] %s2237_s14 }
 0x5d5   :  { %2770 = vmatpush1.bf16.msk.msra.mxu0 %vm3397_vm10, %v2768_v23  ;;  %2789 = vmatprep.subr.msk.bf16.mxu1 %vm3397_vm10, %v2787_v52  ;;  %s2947_s25 = scalar_lea.vmem %s2238_s14, 512  ;;  %p2952_p1 = scmp.lt.s32.totalorder %s2238_s14, %s2238_s14 }
 0x5d6   :  { %2792 = vmatpush1.bf16.msk.msra.mxu1 %vm3397_vm10, %v2790_v57  ;;  %2794 = vmatprep.subr.bf16.mxu0 %v3401_v29  ;;  %p2948_p0 = scmp.ne.s32.totalorder %s2238_s14, %s2947_s25  ;;  %p2953_p2 = scmp.lt.s32.totalorder %s2947_s25, %s2947_s25 }
 0x5d7   :  { %2826 = vmatprep.subr.bf16.mxu1 %v3412_v40 }
 0x5d8   :  { %2273 = vmatmul.mubr.msk.f32.vlgmr.msra.gmra.mrb[12].mxu0 %vm272_vm11, %v1327_v8  ;;  %p2954_p3 = por %p2953_p2, %p2952_p1 }
 0x5d9   :  { %2276 = vmatmul.mubr.msk.f32.vlgmr.msra.gmra.mrb[12].mxu1 %vm272_vm11, %v1327_v8  ;;  %2796 = vmatpush3.bf16.msra.mxu0 %v3444_v58 }
 0x5da   :  { %2828 = vmatpush3.bf16.msra.mxu1 %v3446_v59  ;;  %2798 = vmatprep.subr.bf16.mxu0 %v3456_v3  ;;  %p2955_p4 = pnand %p2954_p3, %p2948_p0 }
 0x5db   :  { %2830 = vmatprep.subr.bf16.mxu1 %v3458_v9 }
 0x5dd   :  { %2800 = vmatpush3.bf16.msra.mxu0 %v3482_v30 }
 0x5de   :  { %2832 = vmatpush3.bf16.msra.mxu1 %v3484_v31  ;;  %2802 = vmatprep.subr.bf16.mxu0 %v3494_v39 }
 0x5df   :  { %2834 = vmatprep.subr.bf16.mxu1 %v3496_v41 }
 0x5e1   :  { %2804 = vmatpush3.bf16.msra.mxu0 %v3518_v55 }
 0x5e2   :  { %2836 = vmatpush3.bf16.msra.mxu1 %v3520_v60  ;;  %2806 = vmatprep.subr.bf16.mxu0 %v3530_v18 }
 0x5e3   :  { %2838 = vmatprep.subr.bf16.mxu1 %v3532_v20 }
 0x5e5   :  { %2808 = vmatpush3.bf16.msra.mxu0 %v3554_v43 }
 0x5e6   :  { %2840 = vmatpush3.bf16.msra.mxu1 %v3556_v44  ;;  %2810 = vmatprep.subr.bf16.mxu0 %v3566_v51 }
 0x5e7   :  { %2842 = vmatprep.subr.bf16.mxu1 %v3568_v33 }
 0x5e9   :  { %2812 = vmatpush3.bf16.msra.mxu0 %v3590_v38 }
 0x5ea   :  { %2844 = vmatpush3.bf16.msra.mxu1 %v3592_v42  ;;  %2814 = vmatprep.subr.bf16.mxu0 %v3602_v53 }
 0x5eb   :  { %2846 = vmatprep.subr.bf16.mxu1 %v3604_v54 }
 0x5ed   :  { %2816 = vmatpush3.bf16.msra.mxu0 %v3626_v24 }
 0x5ee   :  { %2848 = vmatpush3.bf16.msra.mxu1 %v3628_v37  ;;  %2818 = vmatprep.subr.bf16.mxu0 %v3638_v11 }
 0x5ef   :  { %2850 = vmatprep.subr.bf16.mxu1 %v4225_v61 }
 0x5f1   :  { %2820 = vmatpush3.bf16.msra.mxu0 %v4226_v26 }
 0x5f2   :  { %2852 = vmatpush3.bf16.msra.mxu1 %v4227_v21  ;;  %2822 = vmatprep.subr.bf16.mxu0 %v4228_v27 }
 0x5f3   :  { %2854 = vmatprep.subr.bf16.mxu1 %v4229_v19 }
 0x5f5   :  { %2824 = vmatpush3.bf16.msra.mxu0 %v4230_v10 }
 0x5f6   :  { %2856 = vmatpush3.bf16.msra.mxu1 %v4231_v63  ;;  %2279 = vmatprep.subr.msk.mxu0 %vm584_vm12, %v4232_v46 }
 0x5f7   :  { %2282 = vmatprep.subr.msk.mxu1 %vm584_vm12, %v4233_v5 }
 0x6ab   :  { %v1397_v1 = vpop.f32.mrb[12].mxu0 }
 0x6ac   :  { %v1399_v14 = vpop.f32.mrb[13].mxu0  ;;  %v1468_v6 = vpop.f32.mrb[12].mxu1 }
 0x6ad   :  { %v1470_v12 = vpop.f32.mrb[13].mxu1  ;;  %1541 = vmatprep.mubr.f32.mxu0 %v1399_v14 }
 0x6ae   :  { %1542 = vmatmul.mubr.f32.vlgmr.msra.gmra.mrb[14].mxu0 %v1397_v1  ;;  %1611 = vmatprep.mubr.f32.mxu1 %v1470_v12 }
 0x6af   :  { %1612 = vmatmul.mubr.f32.vlgmr.msra.gmra.mrb[14].mxu1 %v1468_v6  ;;  %2280 = vmatpush1.msk.msra.mxu0 %vm584_vm12, %v3712_v36 }
 0x6b0   :  { %2283 = vmatpush1.msk.msra.mxu1 %vm584_vm12, %v4234_v13  ;;  %1685 = vmatprep.mubr.f32.mxu0 %v4201_v50 }
 0x6b1   :  { %1756 = vmatprep.mubr.f32.mxu1 %v4201_v50  ;;  %2858 = vmatprep.subr.bf16.mxu0 %v3401_v29 }
 0x6b2   :  { %2890 = vmatprep.subr.bf16.mxu1 %v3412_v40 }
 0x781   :  { %v2469_v47 = vpop.f32.mrb[14].mxu0 }
 0x782   :  { %v2470_v49 = vpop.f32.mrb[15].mxu0  ;;  %v2504_v22 = vpop.f32.mrb[14].mxu1 }
 0x783   :  { %v2471_v4 = vadd.f32 %v2470_v49, %v2469_v47  ;;  %v2505_v15 = vpop.f32.mrb[15].mxu1 }
 0x784   :  { %v2506_v45 = vadd.f32 %v2505_v15, %v2504_v22 }
 0x786   :  { %v1614_v56 = vadd.f32 %v2506_v45, %v2471_v4 }
 0x788   :  { %v1617_v35 = vmul.f32 0.00390625, %v1614_v56 }
 0x78a   :  { %2281 = vmatmul.mubr.msk.f32.vlgmr.msra.gmra.mrb[16].mxu0 %vm580_vm13, %v1617_v35  ;;  %2284 = vmatmul.mubr.msk.f32.vlgmr.msra.gmra.mrb[16].mxu1 %vm580_vm13, %v1617_v35 }
 0x78b   :  { %2860 = vmatpush3.bf16.msra.mxu0 %v3444_v58  ;;  %2892 = vmatpush3.bf16.msra.mxu1 %v3446_v59 }
 0x78c   :  { %2862 = vmatprep.subr.bf16.mxu0 %v3456_v3  ;;  %2894 = vmatprep.subr.bf16.mxu1 %v3458_v9 }
 0x78f   :  { %2864 = vmatpush3.bf16.msra.mxu0 %v3482_v30  ;;  %2896 = vmatpush3.bf16.msra.mxu1 %v3484_v31 }
 0x790   :  { %2866 = vmatprep.subr.bf16.mxu0 %v3494_v39  ;;  %2898 = vmatprep.subr.bf16.mxu1 %v3496_v41 }
 0x793   :  { %2868 = vmatpush3.bf16.msra.mxu0 %v3518_v55  ;;  %2900 = vmatpush3.bf16.msra.mxu1 %v3520_v60 }
 0x794   :  { %2870 = vmatprep.subr.bf16.mxu0 %v3530_v18  ;;  %2902 = vmatprep.subr.bf16.mxu1 %v3532_v20 }
 0x797   :  { %2872 = vmatpush3.bf16.msra.mxu0 %v3554_v43  ;;  %2904 = vmatpush3.bf16.msra.mxu1 %v3556_v44 }
 0x798   :  { %2874 = vmatprep.subr.bf16.mxu0 %v3566_v51  ;;  %2906 = vmatprep.subr.bf16.mxu1 %v3568_v33 }
 0x79b   :  { %2876 = vmatpush3.bf16.msra.mxu0 %v3590_v38  ;;  %2908 = vmatpush3.bf16.msra.mxu1 %v3592_v42 }
 0x79c   :  { %2878 = vmatprep.subr.bf16.mxu0 %v3602_v53  ;;  %2910 = vmatprep.subr.bf16.mxu1 %v3604_v54 }
 0x79f   :  { %2880 = vmatpush3.bf16.msra.mxu0 %v3626_v24  ;;  %2912 = vmatpush3.bf16.msra.mxu1 %v3628_v37 }
 0x7a0   :  { %2882 = vmatprep.subr.bf16.mxu0 %v3638_v11  ;;  %2914 = vmatprep.subr.bf16.mxu1 %v4225_v61 }
 0x7a3   :  { %2884 = vmatpush3.bf16.msra.mxu0 %v4226_v26  ;;  %2916 = vmatpush3.bf16.msra.mxu1 %v4227_v21 }
 0x7a4   :  { %2886 = vmatprep.subr.bf16.mxu0 %v4228_v27  ;;  %2918 = vmatprep.subr.bf16.mxu1 %v4229_v19 }
 0x7a7   :  { %2888 = vmatpush3.bf16.msra.mxu0 %v4230_v10  ;;  %2920 = vmatpush3.bf16.msra.mxu1 %v4231_v63 }
 0x7a8   :  { %2285 = vmatprep.subr.msk.mxu0 %vm584_vm12, %v4232_v46  ;;  %2288 = vmatprep.subr.msk.mxu1 %vm584_vm12, %v4233_v5 }
 0x85d   :  { %v1687_v11 = vpop.f32.mrb[16].mxu0  ;;  %v1758_v53 = vpop.f32.mrb[16].mxu1 }
 0x85e   :  { %v1763_v54 = vsub.f32 %v1397_v1, %v1687_v11  ;;  %v1765_v29 = vsub.f32 %v1468_v6, %v1758_v53  ;;  %v1689_v33 = vpop.f32.mrb[17].mxu0  ;;  %v1760_v40 = vpop.f32.mrb[17].mxu1  ;;  %v2944_v1 = vld [vmem:[%s4121_s0 + $0x10] sm:$0xff]  ;;  %v2945_v6 = vld [vmem:[%s4121_s0 + $0x8] sm:$0xff] }
 0x85f   :  { %v1764_v58 = vsub.f32 %v1399_v14, %v1689_v33  ;;  %v1766_v59 = vsub.f32 %v1470_v12, %v1760_v40 }
 0x860   :  { %v1767_v30 = vmul.f32 %v1763_v54, %v1763_v54  ;;  %v1769_v31 = vmul.f32 %v1765_v29, %v1765_v29 }
 0x861   :  { %v1768_v3 = vmul.f32 %v1764_v58, %v1764_v58  ;;  %v1770_v9 = vmul.f32 %v1766_v59, %v1766_v59 }
 0x863   :  { %1835 = vmatprep.mubr.f32.mxu0 %v1768_v3  ;;  %1905 = vmatprep.mubr.f32.mxu1 %v1770_v9 }
 0x864   :  { %1836 = vmatmul.mubr.f32.vlgmr.msra.gmra.mrb[18].mxu0 %v1767_v30  ;;  %1906 = vmatmul.mubr.f32.vlgmr.msra.gmra.mrb[18].mxu1 %v1769_v31 }
 0x865   :  { %2286 = vmatpush1.msk.msra.mxu0 %vm584_vm12, %v3712_v36  ;;  %2289 = vmatpush1.msk.msra.mxu1 %vm584_vm12, %v4234_v13 }
 0x866   :  { %1992 = vmatprep.mubr.f32.mxu0 %v4201_v50  ;;  %2063 = vmatprep.mubr.f32.mxu1 %v4201_v50 }
 0x867   :  { %2291 = vmatprep.subr.msk.mxu0 %vm584_vm12, %v4232_v46  ;;  %2294 = vmatprep.subr.msk.mxu1 %vm584_vm12, %v4233_v5  ;;  %v2943_v46 = vld [vmem:[%s4121_s0] sm:$0xff] }
 0x937   :  { %v2539_v39 = vpop.f32.mrb[18].mxu0  ;;  %v2574_v41 = vpop.f32.mrb[18].mxu1 }
 0x938   :  { %v2540_v55 = vpop.f32.mrb[19].mxu0  ;;  %v2575_v60 = vpop.f32.mrb[19].mxu1 }
 0x939   :  { %v2541_v18 = vadd.f32 %v2540_v55, %v2539_v39  ;;  %v2576_v20 = vadd.f32 %v2575_v60, %v2574_v41 }
 0x93b   :  { %v1908_v43 = vadd.f32 %v2576_v20, %v2541_v18 }
 0x93d   :  { %v1911_v44 = vmul.f32 0.003921569, %v1908_v43 }
 0x93f   :  { %2939 = vrsqrt.f32 %v1911_v44  ;;  %vm1914_vm0 = vcmp.eq.f32.partialorder %v1911_v44, inf  ;;  %v1917_v42 = vand.u32 2147483648, %v1911_v44  ;;  %vm1916_vm1 = vcmp.eq.f32.partialorder %v1911_v44, 0.0 }
 0x949   :  { %v2940_v51 = vpop.eup %2939 }
 0x94a   :  { %v1913_v38 = vmul.f32 %v2940_v51, %v1911_v44 }
 0x94c   :  { %v1915_v24 = vsel %vm1914_vm0, %v1911_v44, %v1913_v38 }
 0x94d   :  { %v1918_v37 = vsel %vm1916_vm1, %v1917_v42, %v1915_v24 }
 0x94e   :  { %v1919_v32 = vadd.f32 1e-05, %v1918_v37 }
 0x950   :  { %2941 = vrcp.f32 %v1919_v32 }
 0x95a   :  { %v2942_v7 = vpop.eup %2941 }
 0x95b   :  { %v1921_v17 = vmul.f32 %v2942_v7, %v1919_v32 }
 0x95d   :  { %v1922_v2 = vsub.f32 2.0, %v1921_v17 }
 0x95f   :  { %v1923_v25 = vmul.f32 %v2942_v7, %v1922_v2 }
 0x961   :  { %v1924_v48 = vmul.f32 %v2277_v28, %v1923_v25 }
 0x963   :  { %2287 = vmatmul.mubr.msk.f32.vlgmr.msra.gmra.mrb[20].mxu0 %vm580_vm13, %v1924_v48  ;;  %2290 = vmatmul.mubr.msk.f32.vlgmr.msra.gmra.mrb[20].mxu1 %vm580_vm13, %v1924_v48 }
 0x964   :  { %2292 = vmatpush1.msk.msra.mxu0 %vm584_vm12, %v3712_v36  ;;  %2295 = vmatpush1.msk.msra.mxu1 %vm584_vm12, %v4234_v13  ;;  %v2946_v13 = vld [vmem:[%s4121_s0 + $0x18] sm:$0xff] }
 0x965   :  { %2141 = vmatprep.mubr.f32.mxu0 %v4201_v50  ;;  %2212 = vmatprep.mubr.f32.mxu1 %v4201_v50 }
 0x967   :  { %2293 = vmatmul.mubr.msk.f32.vlgmr.msra.gmra.mrb[22].mxu0 %vm580_vm13, %v2278_v62  ;;  %2296 = vmatmul.mubr.msk.f32.vlgmr.msra.gmra.mrb[22].mxu1 %vm580_vm13, %v2278_v62 }
 0xa36   :  { %v1994_v0 = vpop.f32.mrb[20].mxu0  ;;  %v2065_v34 = vpop.f32.mrb[20].mxu1 }
 0xa37   :  { %v1996_v23 = vpop.f32.mrb[21].mxu0  ;;  %v2067_v52 = vpop.f32.mrb[21].mxu1  ;;  %v2070_v36 = vmul.f32 %v1994_v0, %v1763_v54  ;;  %v2072_v57 = vmul.f32 %v2065_v34, %v1765_v29 }
 0xa38   :  { %v2071_v16 = vmul.f32 %v1996_v23, %v1764_v58  ;;  %v2073_v8 = vmul.f32 %v2067_v52, %v1766_v59 }
 0xa3a   :  { %v2143_v61 = vpop.f32.mrb[22].mxu0  ;;  %v2214_v26 = vpop.f32.mrb[22].mxu1 }
 0xa3b   :  { %v2219_v21 = vadd.f32 %v2143_v61, %v2070_v36  ;;  %v2221_v27 = vadd.f32 %v2214_v26, %v2072_v57  ;;  %v2145_v19 = vpop.f32.mrb[23].mxu0  ;;  %v2216_v10 = vpop.f32.mrb[23].mxu1 }
 0xa3c   :  { %v2220_v50 = vadd.f32 %v2145_v19, %v2071_v16  ;;  %v2222_v63 = vadd.f32 %v2216_v10, %v2073_v8 }
 0xa3d   :  { %v2223_v5 = vadd.f32 %v2943_v46, %v2219_v21  ;;  %v2225_v14 = vadd.f32 %v2944_v1, %v2221_v27 }
 0xa3e   :  { %v2224_v12 = vadd.f32 %v2945_v6, %v2220_v50  ;;  %v2226_v47 = vadd.f32 %v2946_v13, %v2222_v63 }
 0xa3f   :  { %2227 = vst [vmem:[#allocation2] sm:$0xff] %v2223_v5  ;;  %2229 = vst [vmem:[#allocation2 + $0x10] sm:$0xff] %v2225_v14 }
 0xa40   :  { %2228 = vst [vmem:[#allocation2 + $0x8] sm:$0xff] %v2224_v12  ;;  %2230 = vst [vmem:[#allocation2 + $0x18] sm:$0xff] %v2226_v47 }
 0xa41   :  { %2958 = shalt.err (!%p2955_p4)
}
 0xa42   :  { %s2959_s29 = scalar_lea.hbm %s4128_s7, 512 }
 0xa43   :  { %p2960_p5 = scmp.ne.s32.totalorder %s4128_s7, %s2959_s29  ;;  %p2963_p6 = scmp.lt.u32.totalorder %s2959_s29, %s4128_s7 }
 0xa45   :  { %p2965_p7 = pnand %p2963_p6, %p2960_p5 }
 0xa47   :  { %2968 = shalt.err (!%p2965_p7)
}
 0xa48   :  { %2240 = dma.vmem_to_hbm [thread:$0]  %s2238_s14, 512, %s4128_s7, [#allocation3]  }
 0xa49   :  { %2969 = dma.done.wait [#allocation3], 512  }
 0xa4a   :  { %2970 = vsyncadd [#allocation3], 4294966784 }
 0xa4b   :  { %2244 = vsyncpa [#allocation3], 1 }

</bundles_post_ra>
